<compile_context>
chip_gen: v7x
topology: tpu7x:2x2x1
jax: 0.10.0
libtpu: 0.0.40
codegen_flags: <defaults>
</compile_context>

<pallas_src>
import functools

import jax
import jax.numpy as jnp
import numpy as np
from jax.experimental import pallas as pl
from jax.experimental.pallas import tpu as pltpu


_COMPUTE_DTYPE = jnp.bfloat16   # MXU-native; accumulation stays f32
NGF = 8                         # hidden width of the synthetic generator


def _round_up(v, mult):
    return ((v + mult - 1) // mult) * mult


# ----------------------------- Pallas kernel -------------------------------

def _fused_chain_kernel(x_ref, masks_ref, w_a_ref, b_a_ref, w_b_ref, b_b_ref,
                        mid_ref, out_ref, *, img_w, acts, compute_dtype):
    """One generator chain: out = G_B(G_A(x)); G_A's output is also emitted.

    Shapes (all f32 unless noted):
      x_ref    : (1, C_pad, M)        channel-first, pixels on lanes
      masks_ref: (9, M)               0/1 validity mask per conv tap
      w_*_ref  : (1, L, C_pad, 9*C_pad)  per-layer packed weight W[c_out, tap*C_pad+c_in]
      b_*_ref  : (1, L, C_pad, 1)
      mid_ref  : (1, C_pad, M)        G_A(x)
      out_ref  : (1, C_pad, M)        G_B(G_A(x))
    """
    m_pad = x_ref.shape[-1]
    masks = masks_ref[...]                                  # (9, M)

    def conv3x3(a, w_mat, b_col, act_name):
        # a: (C_pad, M); 3x3 "same" conv expressed as one GEMM over on-chip
        # shifted copies of the activation (in-register im2col).
        taps = []
        t = 0
        for dy in range(3):
            for dx in range(3):
                s = (dy - 1) * img_w + (dx - 1)             # flat pixel offset
                shifted = a if s == 0 else pltpu.roll(a, shift=(-s) % m_pad, axis=1)
                taps.append(shifted * masks[t:t + 1, :])    # zero out-of-image taps
                t += 1
        patch = jnp.concatenate(taps, axis=0)               # (9*C_pad, M)
        y = jnp.dot(w_mat.astype(compute_dtype), patch.astype(compute_dtype),
                    preferred_element_type=jnp.float32)     # (C_pad, M), f32 acc
        y = y + b_col
        if act_name == "relu":
            return jnp.maximum(y, 0.0)
        if act_name == "tanh":
            return jnp.tanh(y)
        raise ValueError(f"unsupported activation: {act_name}")

    def run_generator(a, w_ref, b_ref):
        for layer, act_name in enumerate(acts):
            a = conv3x3(a, w_ref[0, layer], b_ref[0, layer], act_name)
        return a

    act0 = x_ref[0]                                          # (C_pad, M)
    mid = run_generator(act0, w_a_ref, b_a_ref)
    mid_ref[0] = mid.astype(mid_ref.dtype)
    out = run_generator(mid, w_b_ref, b_b_ref)
    out_ref[0] = out.astype(out_ref.dtype)


# --------------------------- host-side packing ------------------------------

def _make_tap_masks(n, h, w, m_pad):
    """(9, m_pad) f32 validity masks for the 3x3 same-padding taps."""
    idx = np.arange(m_pad)
    yy = (idx // w) % h
    xx = idx % w
    masks = []
    for dy in range(3):
        for dx in range(3):
            oy, ox = dy - 1, dx - 1
            valid = ((yy + oy >= 0) & (yy + oy < h) &
                     (xx + ox >= 0) & (xx + ox < w))
            masks.append(valid.astype(np.float32))
    return jnp.asarray(np.stack(masks))                      # (9, m_pad)


def _prep_input(x_nchw, c_pad, m_pad):
    """NCHW -> (C_pad, M_pad): channel-first, flattened pixels on lanes."""
    n, c, h, w = x_nchw.shape
    x = jnp.transpose(x_nchw, (1, 0, 2, 3)).reshape(c, n * h * w)
    return jnp.pad(x, ((0, c_pad - c), (0, m_pad - n * h * w)))


def _unpack_output(row, n, c, h, w):
    """(C_pad, M_pad) -> NCHW."""
    a = row[:c, :n * h * w].reshape(c, n, h, w)
    return jnp.transpose(a, (1, 0, 2, 3))


def _prep_weights(params, c_pad, n_layers=3):
    """HWIO conv weights -> packed (L, C_pad, 9*C_pad) GEMM weights + (L, C_pad, 1) biases.

    Packed layout: W[c_out, tap*C_pad + c_in] = w_hwio[dy, dx, c_in, c_out],
    tap = dy*3 + dx, zero padded so there are no masked vreg loads.
    """
    ws, bs = [], []
    for layer in range(1, n_layers + 1):
        w = params[f"w{layer}"]                               # (3,3,cin,cout)
        b = params[f"b{layer}"]                               # (cout,)
        _, _, cin, cout = w.shape
        wt = jnp.transpose(w, (0, 1, 3, 2))                   # (3,3,cout,cin)
        wt = jnp.pad(wt, ((0, 0), (0, 0), (0, c_pad - cout), (0, c_pad - cin)))
        wt = jnp.transpose(wt, (2, 0, 1, 3)).reshape(c_pad, 9 * c_pad)
        bp = jnp.pad(b, (0, c_pad - cout)).reshape(c_pad, 1)
        ws.append(wt.astype(jnp.float32))
        bs.append(bp.astype(jnp.float32))
    return jnp.stack(ws), jnp.stack(bs)


# ------------------------- Generator (AutoEncoder) --------------------------
# TODO(synk): the AutoEncoder / Discriminator class bodies are not in the
# provided snippet; a representative 3-layer conv encoder/decoder
# (conv-relu, conv-relu, conv-tanh) stands in for netGenS2T / netGenT2S.

_ACTS = ("relu", "relu", "tanh")


def init_autoencoder_params(key, in_ch=3, ngf=NGF, gain=0.02):
    """opt.initType == 'normal' analogue: N(0, 0.02) conv weights, zero bias."""
    ks = jax.random.split(key, 3)

    def w(kk, cin, cout):
        return gain * jax.random.normal(kk, (3, 3, cin, cout), jnp.float32)   # HWIO

    return {
        "w1": w(ks[0], in_ch, ngf), "b1": jnp.zeros((ngf,), jnp.float32),
        "w2": w(ks[1], ngf, ngf),   "b2": jnp.zeros((ngf,), jnp.float32),
        "w3": w(ks[2], ngf, in_ch), "b3": jnp.zeros((in_ch,), jnp.float32),
    }


def uid_cyclegan_inference(params_s2t, params_t2s, source, target):
    """UIDCycleGAN.forward(source, target, mode='inference') -> (S2T, T2S, S2T2S, T2S2T)."""
    assert source.shape == target.shape
    n, c, h, w = source.shape
    ngf = params_s2t["w1"].shape[-1]
    c_pad = _round_up(max(c, ngf), 8)
    m = n * h * w
    m_pad = _round_up(m, 128)
    # TODO(synk): for much larger images (m_pad*c_pad beyond a few MiB) add an
    # M-tiled grid axis with halo exchange; unnecessary at these sizes.

    x = jnp.stack([_prep_input(source, c_pad, m_pad),
                   _prep_input(target, c_pad, m_pad)])        # (2, C_pad, M)
    masks = _make_tap_masks(n, h, w, m_pad)                   # (9, M)

    w_s2t, b_s2t = _prep_weights(params_s2t, c_pad)
    w_t2s, b_t2s = _prep_weights(params_t2s, c_pad)
    w_all = jnp.stack([w_s2t, w_t2s])                         # (2, 3, C_pad, 9*C_pad)
    b_all = jnp.stack([b_s2t, b_t2s])                         # (2, 3, C_pad, 1)

    kernel = functools.partial(_fused_chain_kernel, img_w=w, acts=_ACTS,
                               compute_dtype=_COMPUTE_DTYPE)

    mid, out = pl.pallas_call(
        kernel,
        out_shape=(jax.ShapeDtypeStruct((2, c_pad, m_pad), jnp.float32),
                   jax.ShapeDtypeStruct((2, c_pad, m_pad), jnp.float32)),
        grid=(2,),
        in_specs=[
            pl.BlockSpec((1, c_pad, m_pad), lambda i: (i, 0, 0)),              # x (chain i)
            pl.BlockSpec((9, m_pad), lambda i: (0, 0)),                        # tap masks
            pl.BlockSpec((1, 3, c_pad, 9 * c_pad), lambda i: (i, 0, 0, 0)),    # first generator
            pl.BlockSpec((1, 3, c_pad, 1), lambda i: (i, 0, 0, 0)),
            pl.BlockSpec((1, 3, c_pad, 9 * c_pad), lambda i: (1 - i, 0, 0, 0)),  # second generator
            pl.BlockSpec((1, 3, c_pad, 1), lambda i: (1 - i, 0, 0, 0)),
        ],
        out_specs=(pl.BlockSpec((1, c_pad, m_pad), lambda i: (i, 0, 0)),       # G_A(x)
                   pl.BlockSpec((1, c_pad, m_pad), lambda i: (i, 0, 0))),      # G_B(G_A(x))
        compiler_params=pltpu.CompilerParams(
            dimension_semantics=("parallel",)),   # chains are independent -> 2 TCs on v7x
    )(x, masks, w_all, b_all, w_all, b_all)

    s2t = _unpack_output(mid[0], n, c, h, w)
    t2s = _unpack_output(mid[1], n, c, h, w)
    s2t2s = _unpack_output(out[0], n, c, h, w)
    t2s2t = _unpack_output(out[1], n, c, h, w)
    return s2t, t2s, s2t2s, t2s2t


# ------------------------------- Reference ---------------------------------

def _conv_ref(x_nhwc, w, b, act):
    y = jax.lax.conv_general_dilated(
        x_nhwc, w, (1, 1), "SAME",
        dimension_numbers=("NHWC", "HWIO", "NHWC"),
        precision=jax.lax.Precision.HIGHEST) + b
    if act == "relu":
        return jnp.maximum(y, 0.0)
    if act == "tanh":
        return jnp.tanh(y)
    raise ValueError(f"unsupported activation: {act}")


def autoencoder_ref(params, x_nchw):
    x = jnp.transpose(x_nchw, (0, 2, 3, 1))
    h = _conv_ref(x, params["w1"], params["b1"], _ACTS[0])
    h = _conv_ref(h, params["w2"], params["b2"], _ACTS[1])
    y = _conv_ref(h, params["w3"], params["b3"], _ACTS[2])
    return jnp.transpose(y, (0, 3, 1, 2))


# --------------------------------- Main -------------------------------------

if __name__ == "__main__":
    # Parameters (utils.fixSeed(opt.seed) analogue -> deterministic init)
    param_key = jax.random.PRNGKey(42)
    k_s2t, k_t2s = jax.random.split(param_key)
    params_s2t = init_autoencoder_params(k_s2t)
    params_t2s = init_autoencoder_params(k_t2s)

    # Inputs (NCHW, like PyTorch)
    key = jax.random.PRNGKey(0)
    ks, kt = jax.random.split(key)
    source = jax.random.normal(ks, (2, 3, 16, 16), jnp.float32)
    target = jax.random.normal(kt, (2, 3, 16, 16), jnp.float32)

    outs = jax.jit(uid_cyclegan_inference)(params_s2t, params_t2s, source, target)
    outs = jax.block_until_ready(outs)
    s2t, t2s, s2t2s, t2s2t = outs
    assert s2t.shape == source.shape and t2s.shape == target.shape
    assert s2t2s.shape == source.shape and t2s2t.shape == target.shape

    # Check all four generator passes against a plain-JAX f32 conv reference.
    ref_s2t = autoencoder_ref(params_s2t, source)
    ref_t2s = autoencoder_ref(params_t2s, target)
    ref_s2t2s = autoencoder_ref(params_t2s, ref_s2t)
    ref_t2s2t = autoencoder_ref(params_s2t, ref_t2s)
    for got, want in ((s2t, ref_s2t), (t2s, ref_t2s),
                      (s2t2s, ref_s2t2s), (t2s2t, ref_t2s2t)):
        np.testing.assert_allclose(np.asarray(got), np.asarray(want),
                                   atol=2e-2, rtol=2e-2)

    print("KERNEL_OK")
</pallas_src>

<mosaic_0001>
module attributes {stable_mosaic.version = 11 : i64} {
  func.func @_fused_chain_kernel(%arg0: i32, %arg1: memref<1x8x512xf32, #tpu.memory_space<vmem>>, %arg2: memref<9x512xf32, #tpu.memory_space<vmem>>, %arg3: memref<1x3x8x72xf32, #tpu.memory_space<vmem>>, %arg4: memref<1x3x8x1xf32, #tpu.memory_space<vmem>>, %arg5: memref<1x3x8x72xf32, #tpu.memory_space<vmem>>, %arg6: memref<1x3x8x1xf32, #tpu.memory_space<vmem>>, %arg7: memref<1x8x512xf32, #tpu.memory_space<vmem>>, %arg8: memref<1x8x512xf32, #tpu.memory_space<vmem>>) attributes {dimension_semantics = [#tpu.dimension_semantics<parallel>], iteration_bounds = array<i64: 2>, scalar_prefetch = 0 : i64, scratch_operands = 0 : i64, tpu.core_type = #tpu.core_type<tc>, window_params = [{transform_indices = @transform_0, window_bounds = array<i64: 1, 8, 512>}, {pipeline_mode = #tpu.pipeline_mode<synchronous>, transform_indices = @transform_1, window_bounds = array<i64: 9, 512>}, {transform_indices = @transform_2, window_bounds = array<i64: 1, 3, 8, 72>}, {transform_indices = @transform_3, window_bounds = array<i64: 1, 3, 8, 1>}, {transform_indices = @transform_4, window_bounds = array<i64: 1, 3, 8, 72>}, {transform_indices = @transform_5, window_bounds = array<i64: 1, 3, 8, 1>}, {transform_indices = @transform_6, window_bounds = array<i64: 1, 8, 512>}, {transform_indices = @transform_7, window_bounds = array<i64: 1, 8, 512>}]} {
    %c0 = arith.constant 0 : index
    %c0_0 = arith.constant 0 : index
    %0 = vector.load %arg2[%c0, %c0_0] : memref<9x512xf32, #tpu.memory_space<vmem>>, vector<9x512xf32>
    %c0_1 = arith.constant 0 : index
    %c0_2 = arith.constant 0 : index
    %c0_3 = arith.constant 0 : index
    %1 = vector.load %arg1[%c0_1, %c0_2, %c0_3] : memref<1x8x512xf32, #tpu.memory_space<vmem>>, vector<1x8x512xf32>
    %2 = vector.shape_cast %1 : vector<1x8x512xf32> to vector<8x512xf32>
    %c0_4 = arith.constant 0 : index
    %c0_5 = arith.constant 0 : index
    %c0_6 = arith.constant 0 : index
    %c0_7 = arith.constant 0 : index
    %3 = vector.load %arg3[%c0_4, %c0_5, %c0_6, %c0_7] : memref<1x3x8x72xf32, #tpu.memory_space<vmem>>, vector<1x1x8x72xf32>
    %4 = vector.shape_cast %3 : vector<1x1x8x72xf32> to vector<8x72xf32>
    %c0_8 = arith.constant 0 : index
    %c0_9 = arith.constant 0 : index
    %c0_10 = arith.constant 0 : index
    %c0_11 = arith.constant 0 : index
    %5 = vector.load %arg4[%c0_8, %c0_9, %c0_10, %c0_11] : memref<1x3x8x1xf32, #tpu.memory_space<vmem>>, vector<1x1x8x1xf32>
    %6 = vector.shape_cast %5 : vector<1x1x8x1xf32> to vector<8x1xf32>
    %c17_i32 = arith.constant 17 : i32
    %7 = tpu.dynamic_rotate %2 by %c17_i32 dim 1 : vector<8x512xf32>, i32 -> vector<8x512xf32>
    %8 = vector.extract_strided_slice %0 {offsets = [0, 0], sizes = [1, 512], strides = [1, 1]} : vector<9x512xf32> to vector<1x512xf32>
    %9 = vector.broadcast %8 : vector<1x512xf32> to vector<8x512xf32>
    %10 = arith.mulf %7, %9 : vector<8x512xf32>
    %c16_i32 = arith.constant 16 : i32
    %11 = tpu.dynamic_rotate %2 by %c16_i32 dim 1 : vector<8x512xf32>, i32 -> vector<8x512xf32>
    %12 = vector.extract_strided_slice %0 {offsets = [1, 0], sizes = [1, 512], strides = [1, 1]} : vector<9x512xf32> to vector<1x512xf32>
    %13 = vector.broadcast %12 : vector<1x512xf32> to vector<8x512xf32>
    %14 = arith.mulf %11, %13 : vector<8x512xf32>
    %c15_i32 = arith.constant 15 : i32
    %15 = tpu.dynamic_rotate %2 by %c15_i32 dim 1 : vector<8x512xf32>, i32 -> vector<8x512xf32>
    %16 = vector.extract_strided_slice %0 {offsets = [2, 0], sizes = [1, 512], strides = [1, 1]} : vector<9x512xf32> to vector<1x512xf32>
    %17 = vector.broadcast %16 : vector<1x512xf32> to vector<8x512xf32>
    %18 = arith.mulf %15, %17 : vector<8x512xf32>
    %c1_i32 = arith.constant 1 : i32
    %19 = tpu.dynamic_rotate %2 by %c1_i32 dim 1 : vector<8x512xf32>, i32 -> vector<8x512xf32>
    %20 = vector.extract_strided_slice %0 {offsets = [3, 0], sizes = [1, 512], strides = [1, 1]} : vector<9x512xf32> to vector<1x512xf32>
    %21 = vector.broadcast %20 : vector<1x512xf32> to vector<8x512xf32>
    %22 = arith.mulf %19, %21 : vector<8x512xf32>
    %23 = vector.extract_strided_slice %0 {offsets = [4, 0], sizes = [1, 512], strides = [1, 1]} : vector<9x512xf32> to vector<1x512xf32>
    %24 = vector.broadcast %23 : vector<1x512xf32> to vector<8x512xf32>
    %25 = arith.mulf %2, %24 : vector<8x512xf32>
    %c511_i32 = arith.constant 511 : i32
    %26 = tpu.dynamic_rotate %2 by %c511_i32 dim 1 : vector<8x512xf32>, i32 -> vector<8x512xf32>
    %27 = vector.extract_strided_slice %0 {offsets = [5, 0], sizes = [1, 512], strides = [1, 1]} : vector<9x512xf32> to vector<1x512xf32>
    %28 = vector.broadcast %27 : vector<1x512xf32> to vector<8x512xf32>
    %29 = arith.mulf %26, %28 : vector<8x512xf32>
    %c497_i32 = arith.constant 497 : i32
    %30 = tpu.dynamic_rotate %2 by %c497_i32 dim 1 : vector<8x512xf32>, i32 -> vector<8x512xf32>
    %31 = vector.extract_strided_slice %0 {offsets = [6, 0], sizes = [1, 512], strides = [1, 1]} : vector<9x512xf32> to vector<1x512xf32>
    %32 = vector.broadcast %31 : vector<1x512xf32> to vector<8x512xf32>
    %33 = arith.mulf %30, %32 : vector<8x512xf32>
    %c496_i32 = arith.constant 496 : i32
    %34 = tpu.dynamic_rotate %2 by %c496_i32 dim 1 : vector<8x512xf32>, i32 -> vector<8x512xf32>
    %35 = vector.extract_strided_slice %0 {offsets = [7, 0], sizes = [1, 512], strides = [1, 1]} : vector<9x512xf32> to vector<1x512xf32>
    %36 = vector.broadcast %35 : vector<1x512xf32> to vector<8x512xf32>
    %37 = arith.mulf %34, %36 : vector<8x512xf32>
    %c495_i32 = arith.constant 495 : i32
    %38 = tpu.dynamic_rotate %2 by %c495_i32 dim 1 : vector<8x512xf32>, i32 -> vector<8x512xf32>
    %39 = vector.extract_strided_slice %0 {offsets = [8, 0], sizes = [1, 512], strides = [1, 1]} : vector<9x512xf32> to vector<1x512xf32>
    %40 = vector.broadcast %39 : vector<1x512xf32> to vector<8x512xf32>
    %41 = arith.mulf %38, %40 : vector<8x512xf32>
    %42 = tpu.concatenate %10, %14, %18, %22, %25, %29, %33, %37, %41 in 0 : vector<8x512xf32>, vector<8x512xf32>, vector<8x512xf32>, vector<8x512xf32>, vector<8x512xf32>, vector<8x512xf32>, vector<8x512xf32>, vector<8x512xf32>, vector<8x512xf32> -> vector<72x512xf32>
    %43 = arith.truncf %4 : vector<8x72xf32> to vector<8x72xbf16>
    %44 = arith.truncf %42 : vector<72x512xf32> to vector<72x512xbf16>
    %cst = arith.constant dense<0.000000e+00> : vector<8x512xf32>
    %45 = tpu.matmul %43, %44, %cst {dimension_numbers = #tpu.dot_dimension_numbers<[1], [0], [0], [1], [0, 0, 1, 1], [], []>} : vector<8x72xbf16>, vector<72x512xbf16>, vector<8x512xf32> -> vector<8x512xf32>
    %46 = vector.broadcast %6 : vector<8x1xf32> to vector<8x512xf32>
    %47 = arith.addf %45, %46 : vector<8x512xf32>
    %cst_12 = arith.constant 0.000000e+00 : f32
    %48 = vector.broadcast %cst_12 : f32 to vector<8x512xf32>
    %49 = arith.maximumf %47, %48 : vector<8x512xf32>
    %c0_13 = arith.constant 0 : index
    %c1 = arith.constant 1 : index
    %c0_14 = arith.constant 0 : index
    %c0_15 = arith.constant 0 : index
    %50 = vector.load %arg3[%c0_13, %c1, %c0_14, %c0_15] : memref<1x3x8x72xf32, #tpu.memory_space<vmem>>, vector<1x1x8x72xf32>
    %51 = vector.shape_cast %50 : vector<1x1x8x72xf32> to vector<8x72xf32>
    %c0_16 = arith.constant 0 : index
    %c1_17 = arith.constant 1 : index
    %c0_18 = arith.constant 0 : index
    %c0_19 = arith.constant 0 : index
    %52 = vector.load %arg4[%c0_16, %c1_17, %c0_18, %c0_19] : memref<1x3x8x1xf32, #tpu.memory_space<vmem>>, vector<1x1x8x1xf32>
    %53 = vector.shape_cast %52 : vector<1x1x8x1xf32> to vector<8x1xf32>
    %c17_i32_20 = arith.constant 17 : i32
    %54 = tpu.dynamic_rotate %49 by %c17_i32_20 dim 1 : vector<8x512xf32>, i32 -> vector<8x512xf32>
    %55 = vector.extract_strided_slice %0 {offsets = [0, 0], sizes = [1, 512], strides = [1, 1]} : vector<9x512xf32> to vector<1x512xf32>
    %56 = vector.broadcast %55 : vector<1x512xf32> to vector<8x512xf32>
    %57 = arith.mulf %54, %56 : vector<8x512xf32>
    %c16_i32_21 = arith.constant 16 : i32
    %58 = tpu.dynamic_rotate %49 by %c16_i32_21 dim 1 : vector<8x512xf32>, i32 -> vector<8x512xf32>
    %59 = vector.extract_strided_slice %0 {offsets = [1, 0], sizes = [1, 512], strides = [1, 1]} : vector<9x512xf32> to vector<1x512xf32>
    %60 = vector.broadcast %59 : vector<1x512xf32> to vector<8x512xf32>
    %61 = arith.mulf %58, %60 : vector<8x512xf32>
    %c15_i32_22 = arith.constant 15 : i32
    %62 = tpu.dynamic_rotate %49 by %c15_i32_22 dim 1 : vector<8x512xf32>, i32 -> vector<8x512xf32>
    %63 = vector.extract_strided_slice %0 {offsets = [2, 0], sizes = [1, 512], strides = [1, 1]} : vector<9x512xf32> to vector<1x512xf32>
    %64 = vector.broadcast %63 : vector<1x512xf32> to vector<8x512xf32>
    %65 = arith.mulf %62, %64 : vector<8x512xf32>
    %c1_i32_23 = arith.constant 1 : i32
    %66 = tpu.dynamic_rotate %49 by %c1_i32_23 dim 1 : vector<8x512xf32>, i32 -> vector<8x512xf32>
    %67 = vector.extract_strided_slice %0 {offsets = [3, 0], sizes = [1, 512], strides = [1, 1]} : vector<9x512xf32> to vector<1x512xf32>
    %68 = vector.broadcast %67 : vector<1x512xf32> to vector<8x512xf32>
    %69 = arith.mulf %66, %68 : vector<8x512xf32>
    %70 = vector.extract_strided_slice %0 {offsets = [4, 0], sizes = [1, 512], strides = [1, 1]} : vector<9x512xf32> to vector<1x512xf32>
    %71 = vector.broadcast %70 : vector<1x512xf32> to vector<8x512xf32>
    %72 = arith.mulf %49, %71 : vector<8x512xf32>
    %c511_i32_24 = arith.constant 511 : i32
    %73 = tpu.dynamic_rotate %49 by %c511_i32_24 dim 1 : vector<8x512xf32>, i32 -> vector<8x512xf32>
    %74 = vector.extract_strided_slice %0 {offsets = [5, 0], sizes = [1, 512], strides = [1, 1]} : vector<9x512xf32> to vector<1x512xf32>
    %75 = vector.broadcast %74 : vector<1x512xf32> to vector<8x512xf32>
    %76 = arith.mulf %73, %75 : vector<8x512xf32>
    %c497_i32_25 = arith.constant 497 : i32
    %77 = tpu.dynamic_rotate %49 by %c497_i32_25 dim 1 : vector<8x512xf32>, i32 -> vector<8x512xf32>
    %78 = vector.extract_strided_slice %0 {offsets = [6, 0], sizes = [1, 512], strides = [1, 1]} : vector<9x512xf32> to vector<1x512xf32>
    %79 = vector.broadcast %78 : vector<1x512xf32> to vector<8x512xf32>
    %80 = arith.mulf %77, %79 : vector<8x512xf32>
    %c496_i32_26 = arith.constant 496 : i32
    %81 = tpu.dynamic_rotate %49 by %c496_i32_26 dim 1 : vector<8x512xf32>, i32 -> vector<8x512xf32>
    %82 = vector.extract_strided_slice %0 {offsets = [7, 0], sizes = [1, 512], strides = [1, 1]} : vector<9x512xf32> to vector<1x512xf32>
    %83 = vector.broadcast %82 : vector<1x512xf32> to vector<8x512xf32>
    %84 = arith.mulf %81, %83 : vector<8x512xf32>
    %c495_i32_27 = arith.constant 495 : i32
    %85 = tpu.dynamic_rotate %49 by %c495_i32_27 dim 1 : vector<8x512xf32>, i32 -> vector<8x512xf32>
    %86 = vector.extract_strided_slice %0 {offsets = [8, 0], sizes = [1, 512], strides = [1, 1]} : vector<9x512xf32> to vector<1x512xf32>
    %87 = vector.broadcast %86 : vector<1x512xf32> to vector<8x512xf32>
    %88 = arith.mulf %85, %87 : vector<8x512xf32>
    %89 = tpu.concatenate %57, %61, %65, %69, %72, %76, %80, %84, %88 in 0 : vector<8x512xf32>, vector<8x512xf32>, vector<8x512xf32>, vector<8x512xf32>, vector<8x512xf32>, vector<8x512xf32>, vector<8x512xf32>, vector<8x512xf32>, vector<8x512xf32> -> vector<72x512xf32>
    %90 = arith.truncf %51 : vector<8x72xf32> to vector<8x72xbf16>
    %91 = arith.truncf %89 : vector<72x512xf32> to vector<72x512xbf16>
    %cst_28 = arith.constant dense<0.000000e+00> : vector<8x512xf32>
    %92 = tpu.matmul %90, %91, %cst_28 {dimension_numbers = #tpu.dot_dimension_numbers<[1], [0], [0], [1], [0, 0, 1, 1], [], []>} : vector<8x72xbf16>, vector<72x512xbf16>, vector<8x512xf32> -> vector<8x512xf32>
    %93 = vector.broadcast %53 : vector<8x1xf32> to vector<8x512xf32>
    %94 = arith.addf %92, %93 : vector<8x512xf32>
    %cst_29 = arith.constant 0.000000e+00 : f32
    %95 = vector.broadcast %cst_29 : f32 to vector<8x512xf32>
    %96 = arith.maximumf %94, %95 : vector<8x512xf32>
    %c0_30 = arith.constant 0 : index
    %c2 = arith.constant 2 : index
    %c0_31 = arith.constant 0 : index
    %c0_32 = arith.constant 0 : index
    %97 = vector.load %arg3[%c0_30, %c2, %c0_31, %c0_32] : memref<1x3x8x72xf32, #tpu.memory_space<vmem>>, vector<1x1x8x72xf32>
    %98 = vector.shape_cast %97 : vector<1x1x8x72xf32> to vector<8x72xf32>
    %c0_33 = arith.constant 0 : index
    %c2_34 = arith.constant 2 : index
    %c0_35 = arith.constant 0 : index
    %c0_36 = arith.constant 0 : index
    %99 = vector.load %arg4[%c0_33, %c2_34, %c0_35, %c0_36] : memref<1x3x8x1xf32, #tpu.memory_space<vmem>>, vector<1x1x8x1xf32>
    %100 = vector.shape_cast %99 : vector<1x1x8x1xf32> to vector<8x1xf32>
    %c17_i32_37 = arith.constant 17 : i32
    %101 = tpu.dynamic_rotate %96 by %c17_i32_37 dim 1 : vector<8x512xf32>, i32 -> vector<8x512xf32>
    %102 = vector.extract_strided_slice %0 {offsets = [0, 0], sizes = [1, 512], strides = [1, 1]} : vector<9x512xf32> to vector<1x512xf32>
    %103 = vector.broadcast %102 : vector<1x512xf32> to vector<8x512xf32>
    %104 = arith.mulf %101, %103 : vector<8x512xf32>
    %c16_i32_38 = arith.constant 16 : i32
    %105 = tpu.dynamic_rotate %96 by %c16_i32_38 dim 1 : vector<8x512xf32>, i32 -> vector<8x512xf32>
    %106 = vector.extract_strided_slice %0 {offsets = [1, 0], sizes = [1, 512], strides = [1, 1]} : vector<9x512xf32> to vector<1x512xf32>
    %107 = vector.broadcast %106 : vector<1x512xf32> to vector<8x512xf32>
    %108 = arith.mulf %105, %107 : vector<8x512xf32>
    %c15_i32_39 = arith.constant 15 : i32
    %109 = tpu.dynamic_rotate %96 by %c15_i32_39 dim 1 : vector<8x512xf32>, i32 -> vector<8x512xf32>
    %110 = vector.extract_strided_slice %0 {offsets = [2, 0], sizes = [1, 512], strides = [1, 1]} : vector<9x512xf32> to vector<1x512xf32>
    %111 = vector.broadcast %110 : vector<1x512xf32> to vector<8x512xf32>
    %112 = arith.mulf %109, %111 : vector<8x512xf32>
    %c1_i32_40 = arith.constant 1 : i32
    %113 = tpu.dynamic_rotate %96 by %c1_i32_40 dim 1 : vector<8x512xf32>, i32 -> vector<8x512xf32>
    %114 = vector.extract_strided_slice %0 {offsets = [3, 0], sizes = [1, 512], strides = [1, 1]} : vector<9x512xf32> to vector<1x512xf32>
    %115 = vector.broadcast %114 : vector<1x512xf32> to vector<8x512xf32>
    %116 = arith.mulf %113, %115 : vector<8x512xf32>
    %117 = vector.extract_strided_slice %0 {offsets = [4, 0], sizes = [1, 512], strides = [1, 1]} : vector<9x512xf32> to vector<1x512xf32>
    %118 = vector.broadcast %117 : vector<1x512xf32> to vector<8x512xf32>
    %119 = arith.mulf %96, %118 : vector<8x512xf32>
    %c511_i32_41 = arith.constant 511 : i32
    %120 = tpu.dynamic_rotate %96 by %c511_i32_41 dim 1 : vector<8x512xf32>, i32 -> vector<8x512xf32>
    %121 = vector.extract_strided_slice %0 {offsets = [5, 0], sizes = [1, 512], strides = [1, 1]} : vector<9x512xf32> to vector<1x512xf32>
    %122 = vector.broadcast %121 : vector<1x512xf32> to vector<8x512xf32>
    %123 = arith.mulf %120, %122 : vector<8x512xf32>
    %c497_i32_42 = arith.constant 497 : i32
    %124 = tpu.dynamic_rotate %96 by %c497_i32_42 dim 1 : vector<8x512xf32>, i32 -> vector<8x512xf32>
    %125 = vector.extract_strided_slice %0 {offsets = [6, 0], sizes = [1, 512], strides = [1, 1]} : vector<9x512xf32> to vector<1x512xf32>
    %126 = vector.broadcast %125 : vector<1x512xf32> to vector<8x512xf32>
    %127 = arith.mulf %124, %126 : vector<8x512xf32>
    %c496_i32_43 = arith.constant 496 : i32
    %128 = tpu.dynamic_rotate %96 by %c496_i32_43 dim 1 : vector<8x512xf32>, i32 -> vector<8x512xf32>
    %129 = vector.extract_strided_slice %0 {offsets = [7, 0], sizes = [1, 512], strides = [1, 1]} : vector<9x512xf32> to vector<1x512xf32>
    %130 = vector.broadcast %129 : vector<1x512xf32> to vector<8x512xf32>
    %131 = arith.mulf %128, %130 : vector<8x512xf32>
    %c495_i32_44 = arith.constant 495 : i32
    %132 = tpu.dynamic_rotate %96 by %c495_i32_44 dim 1 : vector<8x512xf32>, i32 -> vector<8x512xf32>
    %133 = vector.extract_strided_slice %0 {offsets = [8, 0], sizes = [1, 512], strides = [1, 1]} : vector<9x512xf32> to vector<1x512xf32>
    %134 = vector.broadcast %133 : vector<1x512xf32> to vector<8x512xf32>
    %135 = arith.mulf %132, %134 : vector<8x512xf32>
    %136 = tpu.concatenate %104, %108, %112, %116, %119, %123, %127, %131, %135 in 0 : vector<8x512xf32>, vector<8x512xf32>, vector<8x512xf32>, vector<8x512xf32>, vector<8x512xf32>, vector<8x512xf32>, vector<8x512xf32>, vector<8x512xf32>, vector<8x512xf32> -> vector<72x512xf32>
    %137 = arith.truncf %98 : vector<8x72xf32> to vector<8x72xbf16>
    %138 = arith.truncf %136 : vector<72x512xf32> to vector<72x512xbf16>
    %cst_45 = arith.constant dense<0.000000e+00> : vector<8x512xf32>
    %139 = tpu.matmul %137, %138, %cst_45 {dimension_numbers = #tpu.dot_dimension_numbers<[1], [0], [0], [1], [0, 0, 1, 1], [], []>} : vector<8x72xbf16>, vector<72x512xbf16>, vector<8x512xf32> -> vector<8x512xf32>
    %140 = vector.broadcast %100 : vector<8x1xf32> to vector<8x512xf32>
    %141 = arith.addf %139, %140 : vector<8x512xf32>
    %142 = math.tanh %141 : vector<8x512xf32>
    %c0_46 = arith.constant 0 : index
    %c0_47 = arith.constant 0 : index
    %c0_48 = arith.constant 0 : index
    %143 = vector.load %arg7[%c0_46, %c0_47, %c0_48] : memref<1x8x512xf32, #tpu.memory_space<vmem>>, vector<1x8x512xf32>
    %144 = vector.shape_cast %143 : vector<1x8x512xf32> to vector<8x512xf32>
    %145 = vector.shape_cast %142 : vector<8x512xf32> to vector<1x8x512xf32>
    tpu.vector_store %arg7[%c0_46, %c0_47, %c0_48], %145 {strides = array<i32>} : memref<1x8x512xf32, #tpu.memory_space<vmem>>, vector<1x8x512xf32>,
    %c0_49 = arith.constant 0 : index
    %c0_50 = arith.constant 0 : index
    %c0_51 = arith.constant 0 : index
    %c0_52 = arith.constant 0 : index
    %146 = vector.load %arg5[%c0_49, %c0_50, %c0_51, %c0_52] : memref<1x3x8x72xf32, #tpu.memory_space<vmem>>, vector<1x1x8x72xf32>
    %147 = vector.shape_cast %146 : vector<1x1x8x72xf32> to vector<8x72xf32>
    %c0_53 = arith.constant 0 : index
    %c0_54 = arith.constant 0 : index
    %c0_55 = arith.constant 0 : index
    %c0_56 = arith.constant 0 : index
    %148 = vector.load %arg6[%c0_53, %c0_54, %c0_55, %c0_56] : memref<1x3x8x1xf32, #tpu.memory_space<vmem>>, vector<1x1x8x1xf32>
    %149 = vector.shape_cast %148 : vector<1x1x8x1xf32> to vector<8x1xf32>
    %c17_i32_57 = arith.constant 17 : i32
    %150 = tpu.dynamic_rotate %142 by %c17_i32_57 dim 1 : vector<8x512xf32>, i32 -> vector<8x512xf32>
    %151 = vector.extract_strided_slice %0 {offsets = [0, 0], sizes = [1, 512], strides = [1, 1]} : vector<9x512xf32> to vector<1x512xf32>
    %152 = vector.broadcast %151 : vector<1x512xf32> to vector<8x512xf32>
    %153 = arith.mulf %150, %152 : vector<8x512xf32>
    %c16_i32_58 = arith.constant 16 : i32
    %154 = tpu.dynamic_rotate %142 by %c16_i32_58 dim 1 : vector<8x512xf32>, i32 -> vector<8x512xf32>
    %155 = vector.extract_strided_slice %0 {offsets = [1, 0], sizes = [1, 512], strides = [1, 1]} : vector<9x512xf32> to vector<1x512xf32>
    %156 = vector.broadcast %155 : vector<1x512xf32> to vector<8x512xf32>
    %157 = arith.mulf %154, %156 : vector<8x512xf32>
    %c15_i32_59 = arith.constant 15 : i32
    %158 = tpu.dynamic_rotate %142 by %c15_i32_59 dim 1 : vector<8x512xf32>, i32 -> vector<8x512xf32>
    %159 = vector.extract_strided_slice %0 {offsets = [2, 0], sizes = [1, 512], strides = [1, 1]} : vector<9x512xf32> to vector<1x512xf32>
    %160 = vector.broadcast %159 : vector<1x512xf32> to vector<8x512xf32>
    %161 = arith.mulf %158, %160 : vector<8x512xf32>
    %c1_i32_60 = arith.constant 1 : i32
    %162 = tpu.dynamic_rotate %142 by %c1_i32_60 dim 1 : vector<8x512xf32>, i32 -> vector<8x512xf32>
    %163 = vector.extract_strided_slice %0 {offsets = [3, 0], sizes = [1, 512], strides = [1, 1]} : vector<9x512xf32> to vector<1x512xf32>
    %164 = vector.broadcast %163 : vector<1x512xf32> to vector<8x512xf32>
    %165 = arith.mulf %162, %164 : vector<8x512xf32>
    %166 = vector.extract_strided_slice %0 {offsets = [4, 0], sizes = [1, 512], strides = [1, 1]} : vector<9x512xf32> to vector<1x512xf32>
    %167 = vector.broadcast %166 : vector<1x512xf32> to vector<8x512xf32>
    %168 = arith.mulf %142, %167 : vector<8x512xf32>
    %c511_i32_61 = arith.constant 511 : i32
    %169 = tpu.dynamic_rotate %142 by %c511_i32_61 dim 1 : vector<8x512xf32>, i32 -> vector<8x512xf32>
    %170 = vector.extract_strided_slice %0 {offsets = [5, 0], sizes = [1, 512], strides = [1, 1]} : vector<9x512xf32> to vector<1x512xf32>
    %171 = vector.broadcast %170 : vector<1x512xf32> to vector<8x512xf32>
    %172 = arith.mulf %169, %171 : vector<8x512xf32>
    %c497_i32_62 = arith.constant 497 : i32
    %173 = tpu.dynamic_rotate %142 by %c497_i32_62 dim 1 : vector<8x512xf32>, i32 -> vector<8x512xf32>
    %174 = vector.extract_strided_slice %0 {offsets = [6, 0], sizes = [1, 512], strides = [1, 1]} : vector<9x512xf32> to vector<1x512xf32>
    %175 = vector.broadcast %174 : vector<1x512xf32> to vector<8x512xf32>
    %176 = arith.mulf %173, %175 : vector<8x512xf32>
    %c496_i32_63 = arith.constant 496 : i32
    %177 = tpu.dynamic_rotate %142 by %c496_i32_63 dim 1 : vector<8x512xf32>, i32 -> vector<8x512xf32>
    %178 = vector.extract_strided_slice %0 {offsets = [7, 0], sizes = [1, 512], strides = [1, 1]} : vector<9x512xf32> to vector<1x512xf32>
    %179 = vector.broadcast %178 : vector<1x512xf32> to vector<8x512xf32>
    %180 = arith.mulf %177, %179 : vector<8x512xf32>
    %c495_i32_64 = arith.constant 495 : i32
    %181 = tpu.dynamic_rotate %142 by %c495_i32_64 dim 1 : vector<8x512xf32>, i32 -> vector<8x512xf32>
    %182 = vector.extract_strided_slice %0 {offsets = [8, 0], sizes = [1, 512], strides = [1, 1]} : vector<9x512xf32> to vector<1x512xf32>
    %183 = vector.broadcast %182 : vector<1x512xf32> to vector<8x512xf32>
    %184 = arith.mulf %181, %183 : vector<8x512xf32>
    %185 = tpu.concatenate %153, %157, %161, %165, %168, %172, %176, %180, %184 in 0 : vector<8x512xf32>, vector<8x512xf32>, vector<8x512xf32>, vector<8x512xf32>, vector<8x512xf32>, vector<8x512xf32>, vector<8x512xf32>, vector<8x512xf32>, vector<8x512xf32> -> vector<72x512xf32>
    %186 = arith.truncf %147 : vector<8x72xf32> to vector<8x72xbf16>
    %187 = arith.truncf %185 : vector<72x512xf32> to vector<72x512xbf16>
    %cst_65 = arith.constant dense<0.000000e+00> : vector<8x512xf32>
    %188 = tpu.matmul %186, %187, %cst_65 {dimension_numbers = #tpu.dot_dimension_numbers<[1], [0], [0], [1], [0, 0, 1, 1], [], []>} : vector<8x72xbf16>, vector<72x512xbf16>, vector<8x512xf32> -> vector<8x512xf32>
    %189 = vector.broadcast %149 : vector<8x1xf32> to vector<8x512xf32>
    %190 = arith.addf %188, %189 : vector<8x512xf32>
    %cst_66 = arith.constant 0.000000e+00 : f32
    %191 = vector.broadcast %cst_66 : f32 to vector<8x512xf32>
    %192 = arith.maximumf %190, %191 : vector<8x512xf32>
    %c0_67 = arith.constant 0 : index
    %c1_68 = arith.constant 1 : index
    %c0_69 = arith.constant 0 : index
    %c0_70 = arith.constant 0 : index
    %193 = vector.load %arg5[%c0_67, %c1_68, %c0_69, %c0_70] : memref<1x3x8x72xf32, #tpu.memory_space<vmem>>, vector<1x1x8x72xf32>
    %194 = vector.shape_cast %193 : vector<1x1x8x72xf32> to vector<8x72xf32>
    %c0_71 = arith.constant 0 : index
    %c1_72 = arith.constant 1 : index
    %c0_73 = arith.constant 0 : index
    %c0_74 = arith.constant 0 : index
    %195 = vector.load %arg6[%c0_71, %c1_72, %c0_73, %c0_74] : memref<1x3x8x1xf32, #tpu.memory_space<vmem>>, vector<1x1x8x1xf32>
    %196 = vector.shape_cast %195 : vector<1x1x8x1xf32> to vector<8x1xf32>
    %c17_i32_75 = arith.constant 17 : i32
    %197 = tpu.dynamic_rotate %192 by %c17_i32_75 dim 1 : vector<8x512xf32>, i32 -> vector<8x512xf32>
    %198 = vector.extract_strided_slice %0 {offsets = [0, 0], sizes = [1, 512], strides = [1, 1]} : vector<9x512xf32> to vector<1x512xf32>
    %199 = vector.broadcast %198 : vector<1x512xf32> to vector<8x512xf32>
    %200 = arith.mulf %197, %199 : vector<8x512xf32>
    %c16_i32_76 = arith.constant 16 : i32
    %201 = tpu.dynamic_rotate %192 by %c16_i32_76 dim 1 : vector<8x512xf32>, i32 -> vector<8x512xf32>
    %202 = vector.extract_strided_slice %0 {offsets = [1, 0], sizes = [1, 512], strides = [1, 1]} : vector<9x512xf32> to vector<1x512xf32>
    %203 = vector.broadcast %202 : vector<1x512xf32> to vector<8x512xf32>
    %204 = arith.mulf %201, %203 : vector<8x512xf32>
    %c15_i32_77 = arith.constant 15 : i32
    %205 = tpu.dynamic_rotate %192 by %c15_i32_77 dim 1 : vector<8x512xf32>, i32 -> vector<8x512xf32>
    %206 = vector.extract_strided_slice %0 {offsets = [2, 0], sizes = [1, 512], strides = [1, 1]} : vector<9x512xf32> to vector<1x512xf32>
    %207 = vector.broadcast %206 : vector<1x512xf32> to vector<8x512xf32>
    %208 = arith.mulf %205, %207 : vector<8x512xf32>
    %c1_i32_78 = arith.constant 1 : i32
    %209 = tpu.dynamic_rotate %192 by %c1_i32_78 dim 1 : vector<8x512xf32>, i32 -> vector<8x512xf32>
    %210 = vector.extract_strided_slice %0 {offsets = [3, 0], sizes = [1, 512], strides = [1, 1]} : vector<9x512xf32> to vector<1x512xf32>
    %211 = vector.broadcast %210 : vector<1x512xf32> to vector<8x512xf32>
    %212 = arith.mulf %209, %211 : vector<8x512xf32>
    %213 = vector.extract_strided_slice %0 {offsets = [4, 0], sizes = [1, 512], strides = [1, 1]} : vector<9x512xf32> to vector<1x512xf32>
    %214 = vector.broadcast %213 : vector<1x512xf32> to vector<8x512xf32>
    %215 = arith.mulf %192, %214 : vector<8x512xf32>
    %c511_i32_79 = arith.constant 511 : i32
    %216 = tpu.dynamic_rotate %192 by %c511_i32_79 dim 1 : vector<8x512xf32>, i32 -> vector<8x512xf32>
    %217 = vector.extract_strided_slice %0 {offsets = [5, 0], sizes = [1, 512], strides = [1, 1]} : vector<9x512xf32> to vector<1x512xf32>
    %218 = vector.broadcast %217 : vector<1x512xf32> to vector<8x512xf32>
    %219 = arith.mulf %216, %218 : vector<8x512xf32>
    %c497_i32_80 = arith.constant 497 : i32
    %220 = tpu.dynamic_rotate %192 by %c497_i32_80 dim 1 : vector<8x512xf32>, i32 -> vector<8x512xf32>
    %221 = vector.extract_strided_slice %0 {offsets = [6, 0], sizes = [1, 512], strides = [1, 1]} : vector<9x512xf32> to vector<1x512xf32>
    %222 = vector.broadcast %221 : vector<1x512xf32> to vector<8x512xf32>
    %223 = arith.mulf %220, %222 : vector<8x512xf32>
    %c496_i32_81 = arith.constant 496 : i32
    %224 = tpu.dynamic_rotate %192 by %c496_i32_81 dim 1 : vector<8x512xf32>, i32 -> vector<8x512xf32>
    %225 = vector.extract_strided_slice %0 {offsets = [7, 0], sizes = [1, 512], strides = [1, 1]} : vector<9x512xf32> to vector<1x512xf32>
    %226 = vector.broadcast %225 : vector<1x512xf32> to vector<8x512xf32>
    %227 = arith.mulf %224, %226 : vector<8x512xf32>
    %c495_i32_82 = arith.constant 495 : i32
    %228 = tpu.dynamic_rotate %192 by %c495_i32_82 dim 1 : vector<8x512xf32>, i32 -> vector<8x512xf32>
    %229 = vector.extract_strided_slice %0 {offsets = [8, 0], sizes = [1, 512], strides = [1, 1]} : vector<9x512xf32> to vector<1x512xf32>
    %230 = vector.broadcast %229 : vector<1x512xf32> to vector<8x512xf32>
    %231 = arith.mulf %228, %230 : vector<8x512xf32>
    %232 = tpu.concatenate %200, %204, %208, %212, %215, %219, %223, %227, %231 in 0 : vector<8x512xf32>, vector<8x512xf32>, vector<8x512xf32>, vector<8x512xf32>, vector<8x512xf32>, vector<8x512xf32>, vector<8x512xf32>, vector<8x512xf32>, vector<8x512xf32> -> vector<72x512xf32>
    %233 = arith.truncf %194 : vector<8x72xf32> to vector<8x72xbf16>
    %234 = arith.truncf %232 : vector<72x512xf32> to vector<72x512xbf16>
    %cst_83 = arith.constant dense<0.000000e+00> : vector<8x512xf32>
    %235 = tpu.matmul %233, %234, %cst_83 {dimension_numbers = #tpu.dot_dimension_numbers<[1], [0], [0], [1], [0, 0, 1, 1], [], []>} : vector<8x72xbf16>, vector<72x512xbf16>, vector<8x512xf32> -> vector<8x512xf32>
    %236 = vector.broadcast %196 : vector<8x1xf32> to vector<8x512xf32>
    %237 = arith.addf %235, %236 : vector<8x512xf32>
    %cst_84 = arith.constant 0.000000e+00 : f32
    %238 = vector.broadcast %cst_84 : f32 to vector<8x512xf32>
    %239 = arith.maximumf %237, %238 : vector<8x512xf32>
    %c0_85 = arith.constant 0 : index
    %c2_86 = arith.constant 2 : index
    %c0_87 = arith.constant 0 : index
    %c0_88 = arith.constant 0 : index
    %240 = vector.load %arg5[%c0_85, %c2_86, %c0_87, %c0_88] : memref<1x3x8x72xf32, #tpu.memory_space<vmem>>, vector<1x1x8x72xf32>
    %241 = vector.shape_cast %240 : vector<1x1x8x72xf32> to vector<8x72xf32>
    %c0_89 = arith.constant 0 : index
    %c2_90 = arith.constant 2 : index
    %c0_91 = arith.constant 0 : index
    %c0_92 = arith.constant 0 : index
    %242 = vector.load %arg6[%c0_89, %c2_90, %c0_91, %c0_92] : memref<1x3x8x1xf32, #tpu.memory_space<vmem>>, vector<1x1x8x1xf32>
    %243 = vector.shape_cast %242 : vector<1x1x8x1xf32> to vector<8x1xf32>
    %c17_i32_93 = arith.constant 17 : i32
    %244 = tpu.dynamic_rotate %239 by %c17_i32_93 dim 1 : vector<8x512xf32>, i32 -> vector<8x512xf32>
    %245 = vector.extract_strided_slice %0 {offsets = [0, 0], sizes = [1, 512], strides = [1, 1]} : vector<9x512xf32> to vector<1x512xf32>
    %246 = vector.broadcast %245 : vector<1x512xf32> to vector<8x512xf32>
    %247 = arith.mulf %244, %246 : vector<8x512xf32>
    %c16_i32_94 = arith.constant 16 : i32
    %248 = tpu.dynamic_rotate %239 by %c16_i32_94 dim 1 : vector<8x512xf32>, i32 -> vector<8x512xf32>
    %249 = vector.extract_strided_slice %0 {offsets = [1, 0], sizes = [1, 512], strides = [1, 1]} : vector<9x512xf32> to vector<1x512xf32>
    %250 = vector.broadcast %249 : vector<1x512xf32> to vector<8x512xf32>
    %251 = arith.mulf %248, %250 : vector<8x512xf32>
    %c15_i32_95 = arith.constant 15 : i32
    %252 = tpu.dynamic_rotate %239 by %c15_i32_95 dim 1 : vector<8x512xf32>, i32 -> vector<8x512xf32>
    %253 = vector.extract_strided_slice %0 {offsets = [2, 0], sizes = [1, 512], strides = [1, 1]} : vector<9x512xf32> to vector<1x512xf32>
    %254 = vector.broadcast %253 : vector<1x512xf32> to vector<8x512xf32>
    %255 = arith.mulf %252, %254 : vector<8x512xf32>
    %c1_i32_96 = arith.constant 1 : i32
    %256 = tpu.dynamic_rotate %239 by %c1_i32_96 dim 1 : vector<8x512xf32>, i32 -> vector<8x512xf32>
    %257 = vector.extract_strided_slice %0 {offsets = [3, 0], sizes = [1, 512], strides = [1, 1]} : vector<9x512xf32> to vector<1x512xf32>
    %258 = vector.broadcast %257 : vector<1x512xf32> to vector<8x512xf32>
    %259 = arith.mulf %256, %258 : vector<8x512xf32>
    %260 = vector.extract_strided_slice %0 {offsets = [4, 0], sizes = [1, 512], strides = [1, 1]} : vector<9x512xf32> to vector<1x512xf32>
    %261 = vector.broadcast %260 : vector<1x512xf32> to vector<8x512xf32>
    %262 = arith.mulf %239, %261 : vector<8x512xf32>
    %c511_i32_97 = arith.constant 511 : i32
    %263 = tpu.dynamic_rotate %239 by %c511_i32_97 dim 1 : vector<8x512xf32>, i32 -> vector<8x512xf32>
    %264 = vector.extract_strided_slice %0 {offsets = [5, 0], sizes = [1, 512], strides = [1, 1]} : vector<9x512xf32> to vector<1x512xf32>
    %265 = vector.broadcast %264 : vector<1x512xf32> to vector<8x512xf32>
    %266 = arith.mulf %263, %265 : vector<8x512xf32>
    %c497_i32_98 = arith.constant 497 : i32
    %267 = tpu.dynamic_rotate %239 by %c497_i32_98 dim 1 : vector<8x512xf32>, i32 -> vector<8x512xf32>
    %268 = vector.extract_strided_slice %0 {offsets = [6, 0], sizes = [1, 512], strides = [1, 1]} : vector<9x512xf32> to vector<1x512xf32>
    %269 = vector.broadcast %268 : vector<1x512xf32> to vector<8x512xf32>
    %270 = arith.mulf %267, %269 : vector<8x512xf32>
    %c496_i32_99 = arith.constant 496 : i32
    %271 = tpu.dynamic_rotate %239 by %c496_i32_99 dim 1 : vector<8x512xf32>, i32 -> vector<8x512xf32>
    %272 = vector.extract_strided_slice %0 {offsets = [7, 0], sizes = [1, 512], strides = [1, 1]} : vector<9x512xf32> to vector<1x512xf32>
    %273 = vector.broadcast %272 : vector<1x512xf32> to vector<8x512xf32>
    %274 = arith.mulf %271, %273 : vector<8x512xf32>
    %c495_i32_100 = arith.constant 495 : i32
    %275 = tpu.dynamic_rotate %239 by %c495_i32_100 dim 1 : vector<8x512xf32>, i32 -> vector<8x512xf32>
    %276 = vector.extract_strided_slice %0 {offsets = [8, 0], sizes = [1, 512], strides = [1, 1]} : vector<9x512xf32> to vector<1x512xf32>
    %277 = vector.broadcast %276 : vector<1x512xf32> to vector<8x512xf32>
    %278 = arith.mulf %275, %277 : vector<8x512xf32>
    %279 = tpu.concatenate %247, %251, %255, %259, %262, %266, %270, %274, %278 in 0 : vector<8x512xf32>, vector<8x512xf32>, vector<8x512xf32>, vector<8x512xf32>, vector<8x512xf32>, vector<8x512xf32>, vector<8x512xf32>, vector<8x512xf32>, vector<8x512xf32> -> vector<72x512xf32>
    %280 = arith.truncf %241 : vector<8x72xf32> to vector<8x72xbf16>
    %281 = arith.truncf %279 : vector<72x512xf32> to vector<72x512xbf16>
    %cst_101 = arith.constant dense<0.000000e+00> : vector<8x512xf32>
    %282 = tpu.matmul %280, %281, %cst_101 {dimension_numbers = #tpu.dot_dimension_numbers<[1], [0], [0], [1], [0, 0, 1, 1], [], []>} : vector<8x72xbf16>, vector<72x512xbf16>, vector<8x512xf32> -> vector<8x512xf32>
    %283 = vector.broadcast %243 : vector<8x1xf32> to vector<8x512xf32>
    %284 = arith.addf %282, %283 : vector<8x512xf32>
    %285 = math.tanh %284 : vector<8x512xf32>
    %c0_102 = arith.constant 0 : index
    %c0_103 = arith.constant 0 : index
    %c0_104 = arith.constant 0 : index
    %286 = vector.load %arg8[%c0_102, %c0_103, %c0_104] : memref<1x8x512xf32, #tpu.memory_space<vmem>>, vector<1x8x512xf32>
    %287 = vector.shape_cast %286 : vector<1x8x512xf32> to vector<8x512xf32>
    %288 = vector.shape_cast %285 : vector<8x512xf32> to vector<1x8x512xf32>
    tpu.vector_store %arg8[%c0_102, %c0_103, %c0_104], %288 {strides = array<i32>} : memref<1x8x512xf32, #tpu.memory_space<vmem>>, vector<1x8x512xf32>,
    return
  }
  func.func @transform_0(%arg0: i32) -> (i32, i32, i32) {
    %c0_i32 = arith.constant 0 : i32
    %c0_i32_0 = arith.constant 0 : i32
    %c0_i32_1 = arith.constant 0 : i32
    return %arg0, %c0_i32, %c0_i32_0 : i32, i32, i32
  }
  func.func @transform_1(%arg0: i32) -> (i32, i32) {
    %c0_i32 = arith.constant 0 : i32
    %c0_i32_0 = arith.constant 0 : i32
    %c0_i32_1 = arith.constant 0 : i32
    return %c0_i32, %c0_i32_0 : i32, i32
  }
  func.func @transform_2(%arg0: i32) -> (i32, i32, i32, i32) {
    %c0_i32 = arith.constant 0 : i32
    %c0_i32_0 = arith.constant 0 : i32
    %c0_i32_1 = arith.constant 0 : i32
    %c0_i32_2 = arith.constant 0 : i32
    return %arg0, %c0_i32, %c0_i32_0, %c0_i32_1 : i32, i32, i32, i32
  }
  func.func @transform_3(%arg0: i32) -> (i32, i32, i32, i32) {
    %c0_i32 = arith.constant 0 : i32
    %c0_i32_0 = arith.constant 0 : i32
    %c0_i32_1 = arith.constant 0 : i32
    %c0_i32_2 = arith.constant 0 : i32
    return %arg0, %c0_i32, %c0_i32_0, %c0_i32_1 : i32, i32, i32, i32
  }
  func.func @transform_4(%arg0: i32) -> (i32, i32, i32, i32) {
    %c1_i32 = arith.constant 1 : i32
    %0 = arith.subi %c1_i32, %arg0 : i32
    %c0_i32 = arith.constant 0 : i32
    %c0_i32_0 = arith.constant 0 : i32
    %c0_i32_1 = arith.constant 0 : i32
    %c0_i32_2 = arith.constant 0 : i32
    return %0, %c0_i32, %c0_i32_0, %c0_i32_1 : i32, i32, i32, i32
  }
  func.func @transform_5(%arg0: i32) -> (i32, i32, i32, i32) {
    %c1_i32 = arith.constant 1 : i32
    %0 = arith.subi %c1_i32, %arg0 : i32
    %c0_i32 = arith.constant 0 : i32
    %c0_i32_0 = arith.constant 0 : i32
    %c0_i32_1 = arith.constant 0 : i32
    %c0_i32_2 = arith.constant 0 : i32
    return %0, %c0_i32, %c0_i32_0, %c0_i32_1 : i32, i32, i32, i32
  }
  func.func @transform_6(%arg0: i32) -> (i32, i32, i32) {
    %c0_i32 = arith.constant 0 : i32
    %c0_i32_0 = arith.constant 0 : i32
    %c0_i32_1 = arith.constant 0 : i32
    return %arg0, %c0_i32, %c0_i32_0 : i32, i32, i32
  }
  func.func @transform_7(%arg0: i32) -> (i32, i32, i32) {
    %c0_i32 = arith.constant 0 : i32
    %c0_i32_0 = arith.constant 0 : i32
    %c0_i32_1 = arith.constant 0 : i32
    return %arg0, %c0_i32, %c0_i32_0 : i32, i32, i32
  }
}

</mosaic_0001>

<bundles_post_ra>
// kernel: uid_cyclegan_inference.1
= control target key start
LH: loop header
LB: loop body
LE: loop exit
PB: predicated region body
PF: predicated region fallthrough
CT: control target
= control target key end

     0   :  { %s2427_s24 = smov 0   ;;  %s3790_s0 = inlined_call_operand.vmem [shape: f32[2,8,512], index: 0, kind: input, shape index: {}]   ;;  %s3791_s1 = inlined_call_operand.vmem [shape: f32[9,512], index: 1, kind: input, shape index: {}]   ;;  %s3792_s2 = inlined_call_operand.vmem [shape: f32[2,3,8,72], index: 2, kind: input, shape index: {}, may-alias: {2,4}]   ;;  %s3793_s3 = inlined_call_operand.vmem [shape: f32[2,3,8,1], index: 3, kind: input, shape index: {}, may-alias: {3,5}]   ;;  %s3794_s4 = inlined_call_operand.vmem [shape: f32[2,3,8,72], index: 4, kind: input, shape index: {}, may-alias: {2,4}]   ;;  %s3795_s5 = inlined_call_operand.vmem [shape: f32[2,3,8,1], index: 5, kind: input, shape index: {}, may-alias: {3,5}]   ;;  %s3796_s6 = inlined_call_operand.vmem [shape: f32[2,8,512], index: 6, kind: output, shape index: {0}]   ;;  %s3797_s7 = inlined_call_operand.vmem [shape: f32[2,8,512], index: 7, kind: output, shape index: {1}]  }
   0x1 LB: > { %s2433_s25 = sadd.s32 4294967295, %s2376_s24   ;;  %p2277_p0 = scmp.ge.s32.totalorder %s2376_s24, 1  ;;  %s2376_s24 = sphi %s2427_s24, %s18_s24  }
   0x2   : > { %p288_p1 = scmp.lt.s32.totalorder %s2376_s24, 3 }
   0x4   : > { %p289_p2 = pnand %p2277_p0, %p288_p1 }
   0x5   : > { %p347_p3 = scmp.lt.s32.totalorder (!%p289_p2), %s2433_s25, 1  ;;  %s2378_s8 = smov (!%p289_p2), 17   ;;  %v2385_v4 = vmov (!%p289_p2), 0   ;;  %v409_v6 = vlaneseq (!%p289_p2)  ;;  %v2542_v13 = vld [vmem:[%s3791_s1 + $0x8] sm:$0xff] (!%p289_p2)  ;;  %v2548_v16 = vld [vmem:[%s3791_s1] sm:$0xff] (!%p289_p2)  ;;  %v2553_v17 = vld [vmem:[%s3791_s1 + $0x18] sm:$0xff] (!%p289_p2) }
   0x6   : > { %292 = sbr.rel (%p289_p2) target bundleno = 2440 (0x988), region = 44  ;;  %s2379_s9 = smov (!%p289_p2), 16   ;;  %762 = vmatprep.mubr.bf16.mxu0 (!%p289_p2), %v2385_v4  ;;  %803 = vmatprep.mubr.bf16.mxu1 (!%p289_p2), %v2385_v4  ;;  %v2565_v20 = vld [vmem:[%s3791_s1 + $0x10] sm:$0xff] (!%p289_p2)  ;;  %vm717_vm8 = vcmask (!%p289_p2), 1043456   ;;  %vm713_vm9 = vcmask (!%p289_p2), 588800  }
   0x7   : > { %s2380_s10 = smov (!%p289_p2), 15   ;;  %s2381_s11 = smov (!%p289_p2), 1   ;;  %2348 = vset.pattern.permute.xlu0 (!%p289_p2), %v2385_v4  ;;  %2349 = vset.pattern.permute.xlu1 (!%p289_p2), %v2385_v4  ;;  %v2533_v7 = vshrl.u32 (!%p289_p2), %v409_v6, 7  ;;  %v2535_v10 = vand.u32 (!%p289_p2), 127, %v409_v6 }
   0x8   : > { %s2382_s12 = smov (!%p289_p2), 127   ;;  %s2383_s13 = smov (!%p289_p2), 113  }
   0x9   : > { %s2384_s14 = smov (!%p289_p2), 112   ;;  %s2386_s15 = smov (!%p289_p2), 111   ;;  %v418_v11 = vsub.s32 (!%p289_p2), 0, %v2533_v7  ;;  %v451_v12 = vsub.s32 (!%p289_p2), 1, %v2533_v7  ;;  %vm411_vm0 = vcmp.lt.s32.totalorder (!%p289_p2), %v2535_v10, 17  ;;  %vm444_vm1 = vcmp.lt.s32.totalorder (!%p289_p2), %v2535_v10, 16 }
   0xa   : > { %v484_v53 = vsub.s32 (!%p289_p2), 2, %v2533_v7  ;;  %v517_v54 = vsub.s32 (!%p289_p2), 3, %v2533_v7  ;;  %vm477_vm2 = vcmp.lt.s32.totalorder (!%p289_p2), %v2535_v10, 15  ;;  %vm510_vm3 = vcmp.lt.s32.totalorder (!%p289_p2), %v2535_v10, 1  ;;  %s362_s21 = ssub.s32 (!%p289_p2), 1, %s2433_s25 }
   0xb   : > { %v2557_v18 = vrot.slane (!%p289_p2), %v2542_v13, %v418_v11  ;;  %v2560_v19 = vrot.slane (!%p289_p2), %v2542_v13, %v451_v12  ;;  %v2570_v24 = vrot.slane (!%p289_p2), %v2548_v16, %v418_v11  ;;  %v2573_v25 = vrot.slane (!%p289_p2), %v2548_v16, %v451_v12  ;;  %p363_p4 = scmp.lt.s32.totalorder (!%p289_p2), %s362_s21, 1 }
   0xc   : > { %v2576_v26 = vrot.slane (!%p289_p2), %v2553_v17, %v418_v11  ;;  %v2583_v29 = vrot.slane (!%p289_p2), %v2553_v17, %v451_v12  ;;  %v2586_v30 = vrot.slane (!%p289_p2), %v2565_v20, %v418_v11  ;;  %v2593_v34 = vrot.slane (!%p289_p2), %v2565_v20, %v451_v12 }
   0xd   : > { %s2439_s26 = scalar_select %p347_p3, %s2433_s25, 1  ;;  %v2614_v57 = vrot.slane %v2542_v13, %v484_v53  ;;  %v2617_v58 = vrot.slane %v2542_v13, %v517_v54  ;;  %v2622_v60 = vrot.slane %v2548_v16, %v484_v53  ;;  %v2625_v61 = vrot.slane %v2565_v20, %v484_v53 }
   0xe   : > { %v2628_v62 = vrot.slane %v2553_v17, %v484_v53  ;;  %v2638_v11 = vrot.slane %v2565_v20, %v517_v54  ;;  %vm563_vm4 = vcmp.lt.s32.totalorder %v2535_v10, 127  ;;  %vm629_vm5 = vcmp.lt.s32.totalorder %v2535_v10, 112  ;;  %s3799_s21 = smov (!%p363_p4, %s362_s21), 1 }
   0xf   : > { %s2442_s27 = sshll.u32 %s2439_s26, 5  ;;  %s2329_s16 = smul.u32 24, %s2439_s26  ;;  %vm596_vm6 = vcmp.lt.s32.totalorder %v2535_v10, 113  ;;  %vm662_vm7 = vcmp.lt.s32.totalorder %v2535_v10, 111 }
  0x10   : > { %s351_s30 = scalar_lea.vmem %s3790_s0, %s2442_s27  ;;  %s2330_s25 = smul.u32 24, %s3799_s21 }
  0x11   : > { %v2448_v0 = vld [vmem:[%s351_s30 + $0x10] sm:$0xff]  ;;  %v2450_v1 = vld [vmem:[%s351_s30] sm:$0xff]  ;;  %v2456_v2 = vld [vmem:[%s351_s30 + $0x18] sm:$0xff]  ;;  %s2526_s19 = scalar_lea.vmem %s3793_s3, %s2329_s16  ;;  %s2789_s20 = scalar_lea.vmem %s3792_s2, %s2329_s16 }
  0x12   : > { %405 = vrot.lane.b32.xlu1 %v2448_v0, %s2378_s8  ;;  %401 = vrot.lane.b32.xlu0 %v2450_v1, %s2378_s8  ;;  %v2458_v3 = vld [vmem:[%s351_s30 + $0x8] sm:$0xff]  ;;  %v400_v5 = vld [vmem:[%s2526_s19] sm:$0xff]  ;;  %s3266_s28 = scalar_lea.vmem %s3795_s5, %s2330_s25 }
  0x16   : > { %407 = vrot.lane.b32.xlu1 %v2456_v2, %s2378_s8  ;;  %403 = vrot.lane.b32.xlu0 %v2458_v3, %s2378_s8 }
  0x1a   : > { %438 = vrot.lane.b32.xlu1 %v2458_v3, %s2379_s9  ;;  %436 = vrot.lane.b32.xlu0 %v2450_v1, %s2379_s9 }
  0x1e   : > { %442 = vrot.lane.b32.xlu1 %v2456_v2, %s2379_s9  ;;  %440 = vrot.lane.b32.xlu0 %v2448_v0, %s2379_s9 }
  0x22   : > { %471 = vrot.lane.b32.xlu1 %v2458_v3, %s2380_s10  ;;  %469 = vrot.lane.b32.xlu0 %v2450_v1, %s2380_s10 }
  0x26   : > { %475 = vrot.lane.b32.xlu1 %v2456_v2, %s2380_s10  ;;  %473 = vrot.lane.b32.xlu0 %v2448_v0, %s2380_s10 }
  0x2a   : > { %504 = vrot.lane.b32.xlu1 %v2458_v3, %s2381_s11  ;;  %502 = vrot.lane.b32.xlu0 %v2450_v1, %s2381_s11 }
  0x2e   : > { %508 = vrot.lane.b32.xlu1 %v2456_v2, %s2381_s11  ;;  %506 = vrot.lane.b32.xlu0 %v2448_v0, %s2381_s11 }
  0x32   : > { %557 = vrot.lane.b32.xlu1 %v2458_v3, %s2382_s12  ;;  %555 = vrot.lane.b32.xlu0 %v2450_v1, %s2382_s12 }
  0x36   : > { %561 = vrot.lane.b32.xlu1 %v2456_v2, %s2382_s12  ;;  %559 = vrot.lane.b32.xlu0 %v2448_v0, %s2382_s12 }
  0x3a   : > { %590 = vrot.lane.b32.xlu1 %v2458_v3, %s2383_s13  ;;  %588 = vrot.lane.b32.xlu0 %v2450_v1, %s2383_s13 }
  0x3e   : > { %594 = vrot.lane.b32.xlu1 %v2456_v2, %s2383_s13  ;;  %592 = vrot.lane.b32.xlu0 %v2448_v0, %s2383_s13 }
  0x42   : > { %623 = vrot.lane.b32.xlu1 %v2458_v3, %s2384_s14  ;;  %621 = vrot.lane.b32.xlu0 %v2450_v1, %s2384_s14 }
  0x46   : > { %627 = vrot.lane.b32.xlu1 %v2456_v2, %s2384_s14  ;;  %625 = vrot.lane.b32.xlu0 %v2448_v0, %s2384_s14 }
  0x4a   : > { %656 = vrot.lane.b32.xlu1 %v2458_v3, %s2386_s15  ;;  %654 = vrot.lane.b32.xlu0 %v2450_v1, %s2386_s15 }
  0x4e   : > { %660 = vrot.lane.b32.xlu1 %v2456_v2, %s2386_s15  ;;  %658 = vrot.lane.b32.xlu0 %v2448_v0, %s2386_s15 }
  0x52   : > { %710 = vperm.xlu0 %2348, %v400_v5  }
  0x84   : > { %v406_v8 = vpop.permute.xlu1 %405  ;;  %v402_v9 = vpop.permute.xlu0 %401 }
  0x88   : > { %v408_v14 = vpop.permute.xlu1 %407  ;;  %v404_v15 = vpop.permute.xlu0 %403 }
  0x89   : > { %v414_v21 = vsel %vm411_vm0, %v402_v9, %v404_v15  ;;  %v415_v27 = vsel %vm411_vm0, %v408_v14, %v402_v9  ;;  %v412_v33 = vsel %vm411_vm0, %v406_v8, %v408_v14  ;;  %v413_v35 = vsel %vm411_vm0, %v404_v15, %v406_v8 }
  0x8a   : > { %v433_v31 = vmul.f32 %v2557_v18, %v414_v21  ;;  %v432_v39 = vmul.f32 %v2570_v24, %v415_v27  ;;  %v435_v42 = vmul.f32 %v2576_v26, %v412_v33  ;;  %v434_v46 = vmul.f32 %v2586_v30, %v413_v35 }
  0x8b   : > { %v2635_v9 = vrot.slane %v2548_v16, %v517_v54  ;;  %v2645_v21 = vrot.slane %v2553_v17, %v517_v54  ;;  %v570_v33 = vsub.s32 5, %v2533_v7 }
  0x8c   : > { %v439_v22 = vpop.permute.xlu1 %438  ;;  %v437_v23 = vpop.permute.xlu0 %436 }
  0x8d   : > { %v447_v28 = vsel %vm444_vm1, %v437_v23, %v439_v22  ;;  %v2680_v53 = vrot.slane %v2553_v17, %v570_v33 }
  0x8e   : > { %v466_v32 = vmul.f32 %v2560_v19, %v447_v28 }
  0x90   : > { %v443_v36 = vpop.permute.xlu1 %442  ;;  %v441_v37 = vpop.permute.xlu0 %440  ;;  %v689_v38 = vpack.c.bf16 %v466_v32, %v433_v31 }
  0x91   : > { %v448_v40 = vsel %vm444_vm1, %v443_v36, %v437_v23  ;;  %v446_v41 = vsel %vm444_vm1, %v439_v22, %v441_v37  ;;  %v445_v43 = vsel %vm444_vm1, %v441_v37, %v443_v36  ;;  %v537_v23 = vsub.s32 4, %v2533_v7 }
  0x92   : > { %730 = vmatprep.subr.bf16.mxu0 %v689_v38  ;;  %v465_v44 = vmul.f32 %v2573_v25, %v448_v40  ;;  %v468_v45 = vmul.f32 %v2583_v29, %v445_v43  ;;  %v467_v47 = vmul.f32 %v2593_v34, %v446_v41 }
  0x93   : > { %v2665_v43 = vrot.slane %v2542_v13, %v537_v23 }
  0x94   : > { %v472_v48 = vpop.permute.xlu1 %471  ;;  %v470_v49 = vpop.permute.xlu0 %469  ;;  %v688_v50 = vpack.c.bf16 %v465_v44, %v432_v39  ;;  %v691_v51 = vpack.c.bf16 %v468_v45, %v435_v42  ;;  %v690_v52 = vpack.c.bf16 %v467_v47, %v434_v46  ;;  %v2668_v44 = vrot.slane %v2553_v17, %v537_v23 }
  0x95   : > { %v480_v59 = vsel %vm477_vm2, %v470_v49, %v472_v48  ;;  %v2671_v45 = vrot.slane %v2548_v16, %v537_v23 }
  0x96   : > { %731 = vmatpush1.bf16.msra.mxu0 %v688_v50  ;;  %771 = vmatprep.subr.bf16.mxu1 %v691_v51  ;;  %v499_v12 = vmul.f32 %v2614_v57, %v480_v59  ;;  %v2674_v51 = vrot.slane %v2565_v20, %v537_v23 }
  0x97   : > { %772 = vmatpush1.bf16.msra.mxu1 %v690_v52  ;;  %v2677_v52 = vrot.slane %v2548_v16, %v570_v33 }
  0x98   : > { %v476_v55 = vpop.permute.xlu1 %475  ;;  %v474_v56 = vpop.permute.xlu0 %473 }
  0x99   : > { %v481_v6 = vsel %vm477_vm2, %v476_v55, %v470_v49  ;;  %v479_v14 = vsel %vm477_vm2, %v472_v48, %v474_v56  ;;  %v478_v22 = vsel %vm477_vm2, %v474_v56, %v476_v55  ;;  %v2685_v55 = vrot.slane %v2542_v13, %v570_v33 }
  0x9a   : > { %v498_v27 = vmul.f32 %v2622_v60, %v481_v6  ;;  %v500_v35 = vmul.f32 %v2625_v61, %v479_v14  ;;  %v501_v39 = vmul.f32 %v2628_v62, %v478_v22  ;;  %v2688_v56 = vrot.slane %v2565_v20, %v570_v33 }
  0x9b   : > { %v554_v6 = vmul.f32 %v2668_v44, %v2456_v2 }
  0x9c   : > { %v505_v63 = vpop.permute.xlu1 %504  ;;  %v503_v5 = vpop.permute.xlu0 %502 }
  0x9d   : > { %v513_v8 = vsel %vm510_vm3, %v503_v5, %v505_v63 }
  0x9e   : > { %v532_v15 = vmul.f32 %v2617_v58, %v513_v8  ;;  %v551_v8 = vmul.f32 %v2671_v45, %v2450_v1 }
  0xa0   : > { %v509_v28 = vpop.permute.xlu1 %508  ;;  %v507_v31 = vpop.permute.xlu0 %506  ;;  %v693_v32 = vpack.c.bf16 %v532_v15, %v499_v12  ;;  %v553_v12 = vmul.f32 %v2674_v51, %v2448_v0 }
  0xa1   : > { %v514_v36 = vsel %vm510_vm3, %v509_v28, %v503_v5  ;;  %v511_v37 = vsel %vm510_vm3, %v507_v31, %v509_v28  ;;  %v512_v38 = vsel %vm510_vm3, %v505_v63, %v507_v31  ;;  %v552_v5 = vmul.f32 %v2665_v43, %v2458_v3 }
  0xa2   : > { %v531_v40 = vmul.f32 %v2635_v9, %v514_v36  ;;  %v533_v41 = vmul.f32 %v2638_v11, %v512_v38  ;;  %v534_v42 = vmul.f32 %v2645_v21, %v511_v37  ;;  %732 = vmatprep.subr.bf16.mxu0 %v693_v32  ;;  %v636_v37 = vsub.s32 7, %v2533_v7 }
  0xa3   : > { %v603_v38 = vsub.s32 6, %v2533_v7 }
  0xa4   : > { %v558_v46 = vpop.permute.xlu1 %557  ;;  %v556_v47 = vpop.permute.xlu0 %555  ;;  %v692_v48 = vpack.c.bf16 %v531_v40, %v498_v27  ;;  %v695_v49 = vpack.c.bf16 %v534_v42, %v501_v39  ;;  %v694_v50 = vpack.c.bf16 %v533_v41, %v500_v35 }
  0xa5   : > { %v566_v54 = vsel %vm563_vm4, %v556_v47, %v558_v46  ;;  %v2713_v39 = vrot.slane %v2553_v17, %v603_v38  ;;  %v2716_v40 = vrot.slane %v2542_v13, %v603_v38 }
  0xa6   : > { %733 = vmatpush1.bf16.msra.mxu0 %v692_v48  ;;  %773 = vmatprep.subr.bf16.mxu1 %v695_v49  ;;  %v584_v14 = vmul.f32 %v2677_v52, %v566_v54  ;;  %v2726_v48 = vrot.slane %v2548_v16, %v636_v37  ;;  %v2734_v54 = vrot.slane %v2542_v13, %v636_v37 }
  0xa7   : > { %774 = vmatpush1.bf16.msra.mxu1 %v694_v50  ;;  %v2731_v50 = vrot.slane %v2553_v17, %v636_v37 }
  0xa8   : > { %v562_v59 = vpop.permute.xlu1 %561  ;;  %v560_v63 = vpop.permute.xlu0 %559  ;;  %v696_v33 = vpack.c.bf16 %v584_v14, %v551_v8 }
  0xa9   : > { %v567_v15 = vsel %vm563_vm4, %v562_v59, %v556_v47  ;;  %v564_v22 = vsel %vm563_vm4, %v560_v63, %v562_v59  ;;  %v565_v3 = vsel %vm563_vm4, %v558_v46, %v560_v63  ;;  %v2721_v47 = vrot.slane %v2565_v20, %v603_v38 }
  0xaa   : > { %v587_v23 = vmul.f32 %v2680_v53, %v567_v15  ;;  %v585_v2 = vmul.f32 %v2685_v55, %v565_v3  ;;  %v586_v1 = vmul.f32 %v2688_v56, %v564_v22  ;;  %v2737_v59 = vrot.slane %v2565_v20, %v636_v37 }
  0xab   : > { %v2740_v63 = vrot.slane %v2548_v16, %v603_v38  ;;  %v2772_v38 = vld [vmem:[%s3791_s1 + $0x38] ss:$0 sm:$0xff] }
  0xac   : > { %v591_v27 = vpop.permute.xlu1 %590  ;;  %v589_v28 = vpop.permute.xlu0 %588  ;;  %v697_v0 = vpack.c.bf16 %v585_v2, %v552_v5  ;;  %v699_v31 = vpack.c.bf16 %v587_v23, %v554_v6  ;;  %v698_v32 = vpack.c.bf16 %v586_v1, %v553_v12 }
  0xad   : > { %v599_v6 = vsel %vm596_vm6, %v589_v28, %v591_v27 }
  0xae   : > { %734 = vmatprep.subr.bf16.mxu0 %v697_v0  ;;  %775 = vmatprep.subr.bf16.mxu1 %v699_v31  ;;  %v617_v1 = vmul.f32 %v2740_v63, %v599_v6 }
  0xaf   : > { %735 = vmatpush1.bf16.msra.mxu0 %v696_v33  ;;  %776 = vmatpush1.bf16.msra.mxu1 %v698_v32 }
  0xb0   : > { %v595_v35 = vpop.permute.xlu1 %594  ;;  %v593_v36 = vpop.permute.xlu0 %592 }
  0xb1   : > { %v600_v46 = vsel %vm596_vm6, %v595_v35, %v589_v28  ;;  %v598_v7 = vsel %vm596_vm6, %v591_v27, %v593_v36  ;;  %v597_v5 = vsel %vm596_vm6, %v593_v36, %v595_v35  ;;  %v2764_v27 = vld [vmem:[%s3791_s1 + $0x20] ss:$0 sm:$0xff] }
  0xb2   : > { %v620_v17 = vmul.f32 %v2713_v39, %v600_v46  ;;  %v618_v8 = vmul.f32 %v2716_v40, %v598_v7  ;;  %v619_v22 = vmul.f32 %v2721_v47, %v597_v5 }
  0xb4   : > { %v624_v41 = vpop.permute.xlu1 %623  ;;  %v622_v42 = vpop.permute.xlu0 %621 }
  0xb5   : > { %v632_v49 = vsel %vm629_vm5, %v622_v42, %v624_v41 }
  0xb6   : > { %v650_v20 = vmul.f32 %v2726_v48, %v632_v49 }
  0xb8   : > { %v628_v13 = vpop.permute.xlu1 %627  ;;  %v626_v12 = vpop.permute.xlu0 %625  ;;  %v700_v36 = vpack.c.bf16 %v650_v20, %v617_v1  ;;  %v399_v20 = vld [vmem:[%s2789_s20] sm:$0xff] }
  0xb9   : > { %v633_v16 = vsel %vm629_vm5, %v628_v13, %v622_v42  ;;  %v630_v14 = vsel %vm629_vm5, %v626_v12, %v628_v13  ;;  %v631_v15 = vsel %vm629_vm5, %v624_v41, %v626_v12  ;;  %v2777_v41 = vld [vmem:[%s3791_s1 + $0x28] ss:$0 sm:$0xff]  ;;  %v2782_v42 = vld [vmem:[%s3791_s1 + $0x30] ss:$0 sm:$0xff] }
  0xba   : > { %v653_v3 = vmul.f32 %v2731_v50, %v633_v16  ;;  %v651_v23 = vmul.f32 %v2734_v54, %v631_v15  ;;  %v652_v2 = vmul.f32 %v2737_v59, %v630_v14 }
  0xbc   : > { %v657_v28 = vpop.permute.xlu1 %656  ;;  %v655_v0 = vpop.permute.xlu0 %654  ;;  %v701_v31 = vpack.c.bf16 %v651_v23, %v618_v8  ;;  %v703_v32 = vpack.c.bf16 %v653_v3, %v620_v17  ;;  %v702_v33 = vpack.c.bf16 %v652_v2, %v619_v22  ;;  %v687_v23 = vpack.c.bf16 %v399_v20, %v399_v20 }
  0xbd   : > { %v665_v35 = vsel %vm662_vm7, %v655_v0, %v657_v28 }
  0xbe   : > { %736 = vmatprep.subr.bf16.mxu0 %v701_v31  ;;  %777 = vmatprep.subr.bf16.mxu1 %v703_v32  ;;  %v683_v37 = vmul.f32 %v2764_v27, %v665_v35 }
  0xbf   : > { %737 = vmatpush1.bf16.msra.mxu0 %v700_v36  ;;  %778 = vmatpush1.bf16.msra.mxu1 %v702_v33 }
  0xc0   : > { %v661_v46 = vpop.permute.xlu1 %660  ;;  %v659_v7 = vpop.permute.xlu0 %658  ;;  %v704_v13 = vpack.c.bf16 %v683_v37, %v683_v37 }
  0xc1   : > { %v666_v49 = vsel %vm662_vm7, %v661_v46, %v655_v0  ;;  %v663_v5 = vsel %vm662_vm7, %v659_v7, %v661_v46  ;;  %v664_v6 = vsel %vm662_vm7, %v657_v28, %v659_v7 }
  0xc2   : > { %v686_v17 = vmul.f32 %v2772_v38, %v666_v49  ;;  %v684_v8 = vmul.f32 %v2777_v41, %v664_v6  ;;  %v685_v12 = vmul.f32 %v2782_v42, %v663_v5  ;;  %v719_v22 = vsel %vm717_vm8, %v704_v13, 0  ;;  %v2297_v13 = vld [vmem:[%s2526_s19 + $0x8] sm:$0xff] }
  0xc4   : > { %v707_v16 = vpack.c.bf16 %v686_v17, %v686_v17  ;;  %v705_v14 = vpack.c.bf16 %v684_v8, %v684_v8  ;;  %v706_v15 = vpack.c.bf16 %v685_v12, %v685_v12 }
  0xc6   : > { %2292 = vmatprep.subr.msk.bf16.mxu0 %vm717_vm8, %v705_v14  ;;  %2294 = vmatprep.subr.msk.bf16.mxu1 %vm717_vm8, %v707_v16  ;;  %v725_v3 = vsel %vm717_vm8, %v706_v15, 0 }
  0xc7   : > { %739 = vmatpush1.bf16.msra.mxu0 %v719_v22  ;;  %780 = vmatpush1.bf16.msra.mxu1 %v725_v3 }
  0xca   : > { %2293 = vmatmul.mubr.msk.bf16.vlgmr.msra.gmra.mrb[0].mxu0 %vm713_vm9, %v687_v23  ;;  %2295 = vmatmul.mubr.msk.bf16.vlgmr.msra.gmra.mrb[0].mxu1 %vm713_vm9, %v687_v23 }
  0xcb   : > { %1025 = vmatprep.mubr.bf16.mxu0 %v2385_v4  ;;  %1066 = vmatprep.mubr.bf16.mxu1 %v2385_v4 }
  0xd1   : > { %v711_v2 = vpop.permute.xlu0 %710 }
 0x19d   : > { %v805_v1 = vpop.f32.mrb[0].mxu1  ;;  %v764_v28 = vpop.f32.mrb[0].mxu0 }
 0x19e   : > { %v806_v0 = vadd.f32 %v805_v1, %v711_v2  ;;  %v765_v31 = vadd.f32 %v764_v28, %v711_v2  ;;  %v766_v32 = vpop.f32.mrb[1].mxu0  ;;  %v807_v33 = vpop.f32.mrb[1].mxu1 }
 0x19f   : > { %v768_v35 = vpop.f32.mrb[2].mxu0  ;;  %v809_v36 = vpop.f32.mrb[2].mxu1  ;;  %v767_v7 = vadd.f32 %v766_v32, %v711_v2  ;;  %v808_v17 = vadd.f32 %v807_v33, %v711_v2 }
 0x1a0   : > { %v2809_v37 = vmax.f32 %v806_v0, 0.0  ;;  %v2811_v46 = vmax.f32 %v765_v31, 0.0  ;;  %v769_v49 = vpop.f32.mrb[3].mxu0  ;;  %v810_v5 = vpop.f32.mrb[3].mxu1 }
 0x1a1   : > { %v2817_v6 = vmax.f32 %v767_v7, 0.0  ;;  %v2823_v8 = vmax.f32 %v808_v17, 0.0 }
 0x1a2   : > { %824 = vrot.lane.b32.xlu0 %v2809_v37, %s2378_s8  ;;  %820 = vrot.lane.b32.xlu1 %v2811_v46, %s2378_s8 }
 0x1a6   : > { %836 = vrot.lane.b32.xlu0 %v2811_v46, %s2379_s9  ;;  %822 = vrot.lane.b32.xlu1 %v2817_v6, %s2378_s8 }
 0x1aa   : > { %840 = vrot.lane.b32.xlu0 %v2809_v37, %s2379_s9  ;;  %826 = vrot.lane.b32.xlu1 %v2823_v8, %s2378_s8 }
 0x1ae   : > { %852 = vrot.lane.b32.xlu0 %v2811_v46, %s2380_s10  ;;  %838 = vrot.lane.b32.xlu1 %v2817_v6, %s2379_s9 }
 0x1b2   : > { %856 = vrot.lane.b32.xlu0 %v2809_v37, %s2380_s10  ;;  %842 = vrot.lane.b32.xlu1 %v2823_v8, %s2379_s9 }
 0x1b6   : > { %868 = vrot.lane.b32.xlu0 %v2811_v46, %s2381_s11  ;;  %854 = vrot.lane.b32.xlu1 %v2817_v6, %s2380_s10 }
 0x1ba   : > { %872 = vrot.lane.b32.xlu0 %v2809_v37, %s2381_s11  ;;  %858 = vrot.lane.b32.xlu1 %v2823_v8, %s2380_s10 }
 0x1be   : > { %888 = vrot.lane.b32.xlu0 %v2811_v46, %s2382_s12  ;;  %870 = vrot.lane.b32.xlu1 %v2817_v6, %s2381_s11 }
 0x1c2   : > { %892 = vrot.lane.b32.xlu0 %v2809_v37, %s2382_s12  ;;  %874 = vrot.lane.b32.xlu1 %v2823_v8, %s2381_s11 }
 0x1c6   : > { %904 = vrot.lane.b32.xlu0 %v2811_v46, %s2383_s13  ;;  %890 = vrot.lane.b32.xlu1 %v2817_v6, %s2382_s12 }
 0x1ca   : > { %908 = vrot.lane.b32.xlu0 %v2809_v37, %s2383_s13  ;;  %894 = vrot.lane.b32.xlu1 %v2823_v8, %s2382_s12 }
 0x1ce   : > { %920 = vrot.lane.b32.xlu0 %v2811_v46, %s2384_s14  ;;  %906 = vrot.lane.b32.xlu1 %v2817_v6, %s2383_s13 }
 0x1d2   : > { %924 = vrot.lane.b32.xlu0 %v2809_v37, %s2384_s14  ;;  %910 = vrot.lane.b32.xlu1 %v2823_v8, %s2383_s13 }
 0x1d6   : > { %936 = vrot.lane.b32.xlu0 %v2811_v46, %s2386_s15  ;;  %922 = vrot.lane.b32.xlu1 %v2817_v6, %s2384_s14 }
 0x1da   : > { %940 = vrot.lane.b32.xlu0 %v2809_v37, %s2386_s15  ;;  %926 = vrot.lane.b32.xlu1 %v2823_v8, %s2384_s14 }
 0x1de   : > { %975 = vperm.xlu0 %2348, %v2297_v13   ;;  %938 = vrot.lane.b32.xlu1 %v2817_v6, %s2386_s15 }
 0x1e2   : > { %942 = vrot.lane.b32.xlu1 %v2823_v8, %s2386_s15 }
 0x214   : > { %v825_v12 = vpop.permute.xlu0 %824  ;;  %v821_v20 = vpop.permute.xlu1 %820 }
 0x218   : > { %v837_v16 = vpop.permute.xlu0 %836  ;;  %v823_v14 = vpop.permute.xlu1 %822 }
 0x219   : > { %v830_v3 = vsel %vm411_vm0, %v821_v20, %v823_v14  ;;  %v829_v35 = vsel %vm411_vm0, %v823_v14, %v825_v12 }
 0x21a   : > { %v833_v28 = vmul.f32 %v830_v3, %v2557_v18 }
 0x21c   : > { %v841_v15 = vpop.permute.xlu0 %840  ;;  %v827_v22 = vpop.permute.xlu1 %826 }
 0x21d   : > { %v828_v32 = vsel %vm411_vm0, %v825_v12, %v827_v22  ;;  %v831_v33 = vsel %vm411_vm0, %v827_v22, %v821_v20  ;;  %v834_v12 = vmul.f32 %v829_v35, %v2586_v30 }
 0x21e   : > { %v832_v3 = vmul.f32 %v831_v33, %v2570_v24 }
 0x220   : > { %v853_v23 = vpop.permute.xlu0 %852  ;;  %v839_v2 = vpop.permute.xlu1 %838 }
 0x221   : > { %v846_v1 = vsel %vm444_vm1, %v837_v16, %v839_v2  ;;  %v845_v0 = vsel %vm444_vm1, %v839_v2, %v841_v15  ;;  %v835_v2 = vmul.f32 %v828_v32, %v2576_v26 }
 0x222   : > { %v849_v31 = vmul.f32 %v846_v1, %v2560_v19  ;;  %v850_v5 = vmul.f32 %v845_v0, %v2593_v34 }
 0x224   : > { %v857_v36 = vpop.permute.xlu0 %856  ;;  %v843_v7 = vpop.permute.xlu1 %842  ;;  %v954_v49 = vpack.c.bf16 %v849_v31, %v833_v28  ;;  %v955_v31 = vpack.c.bf16 %v850_v5, %v834_v12 }
 0x225   : > { %v844_v17 = vsel %vm444_vm1, %v841_v15, %v843_v7  ;;  %v847_v13 = vsel %vm444_vm1, %v843_v7, %v837_v16 }
 0x226   : > { %v848_v20 = vmul.f32 %v847_v13, %v2573_v25  ;;  %v851_v22 = vmul.f32 %v844_v17, %v2583_v29  ;;  %993 = vmatprep.subr.bf16.mxu0 %v954_v49 }
 0x228   : > { %v953_v14 = vpack.c.bf16 %v848_v20, %v832_v3  ;;  %v869_v1 = vpop.permute.xlu0 %868  ;;  %v855_v28 = vpop.permute.xlu1 %854  ;;  %v956_v0 = vpack.c.bf16 %v851_v22, %v835_v2 }
 0x229   : > { %v862_v32 = vsel %vm477_vm2, %v853_v23, %v855_v28  ;;  %v861_v2 = vsel %vm477_vm2, %v855_v28, %v857_v36 }
 0x22a   : > { %994 = vmatpush1.bf16.msra.mxu0 %v953_v14  ;;  %1034 = vmatprep.subr.bf16.mxu1 %v956_v0  ;;  %v865_v35 = vmul.f32 %v862_v32, %v2614_v57 }
 0x22b   : > { %1035 = vmatpush1.bf16.msra.mxu1 %v955_v31 }
 0x22c   : > { %v873_v16 = vpop.permute.xlu0 %872  ;;  %v859_v15 = vpop.permute.xlu1 %858 }
 0x22d   : > { %v860_v13 = vsel %vm477_vm2, %v857_v36, %v859_v15  ;;  %v863_v3 = vsel %vm477_vm2, %v859_v15, %v853_v23  ;;  %v866_v36 = vmul.f32 %v861_v2, %v2625_v61  ;;  %v885_v2 = vmul.f32 %v2817_v6, %v2665_v43 }
 0x22e   : > { %v864_v32 = vmul.f32 %v863_v3, %v2622_v60  ;;  %v887_v6 = vmul.f32 %v2823_v8, %v2668_v44 }
 0x230   : > { %v889_v33 = vpop.permute.xlu0 %888  ;;  %v871_v7 = vpop.permute.xlu1 %870 }
 0x231   : > { %v878_v49 = vsel %vm510_vm3, %v869_v1, %v871_v7  ;;  %v877_v17 = vsel %vm510_vm3, %v871_v7, %v873_v16  ;;  %v867_v7 = vmul.f32 %v860_v13, %v2628_v62 }
 0x232   : > { %v881_v5 = vmul.f32 %v878_v49, %v2617_v58  ;;  %v882_v14 = vmul.f32 %v877_v17, %v2638_v11 }
 0x234   : > { %v893_v20 = vpop.permute.xlu0 %892  ;;  %v875_v22 = vpop.permute.xlu1 %874  ;;  %v958_v12 = vpack.c.bf16 %v881_v5, %v865_v35  ;;  %v959_v5 = vpack.c.bf16 %v882_v14, %v866_v36 }
 0x235   : > { %v876_v0 = vsel %vm510_vm3, %v873_v16, %v875_v22  ;;  %v879_v31 = vsel %vm510_vm3, %v875_v22, %v869_v1  ;;  %v884_v16 = vmul.f32 %v2811_v46, %v2671_v45 }
 0x236   : > { %v880_v23 = vmul.f32 %v879_v31, %v2635_v9  ;;  %v883_v15 = vmul.f32 %v876_v0, %v2645_v21  ;;  %995 = vmatprep.subr.bf16.mxu0 %v958_v12 }
 0x238   : > { %v957_v28 = vpack.c.bf16 %v880_v23, %v864_v32  ;;  %v905_v49 = vpop.permute.xlu0 %904  ;;  %v891_v35 = vpop.permute.xlu1 %890  ;;  %v960_v17 = vpack.c.bf16 %v883_v15, %v867_v7  ;;  %v886_v7 = vmul.f32 %v2809_v37, %v2674_v51 }
 0x239   : > { %v897_v1 = vsel %vm563_vm4, %v891_v35, %v893_v20  ;;  %v898_v13 = vsel %vm563_vm4, %v889_v33, %v891_v35 }
 0x23a   : > { %v900_v3 = vmul.f32 %v898_v13, %v2677_v52  ;;  %v901_v22 = vmul.f32 %v897_v1, %v2685_v55  ;;  %996 = vmatpush1.bf16.msra.mxu0 %v957_v28  ;;  %1036 = vmatprep.subr.bf16.mxu1 %v960_v17 }
 0x23b   : > { %1037 = vmatpush1.bf16.msra.mxu1 %v959_v5 }
 0x23c   : > { %v961_v12 = vpack.c.bf16 %v900_v3, %v884_v16  ;;  %v909_v14 = vpop.permute.xlu0 %908  ;;  %v895_v0 = vpop.permute.xlu1 %894  ;;  %v962_v46 = vpack.c.bf16 %v901_v22, %v885_v2 }
 0x23d   : > { %v896_v31 = vsel %vm563_vm4, %v893_v20, %v895_v0  ;;  %v899_v32 = vsel %vm563_vm4, %v895_v0, %v889_v33 }
 0x23e   : > { %v902_v23 = vmul.f32 %v896_v31, %v2688_v56  ;;  %v903_v15 = vmul.f32 %v899_v32, %v2680_v53  ;;  %997 = vmatprep.subr.bf16.mxu0 %v962_v46 }
 0x23f   : > { %998 = vmatpush1.bf16.msra.mxu0 %v961_v12 }
 0x240   : > { %v963_v36 = vpack.c.bf16 %v902_v23, %v886_v7  ;;  %v921_v28 = vpop.permute.xlu0 %920  ;;  %v907_v35 = vpop.permute.xlu1 %906  ;;  %v964_v17 = vpack.c.bf16 %v903_v15, %v887_v6 }
 0x241   : > { %v913_v37 = vsel %vm596_vm6, %v907_v35, %v909_v14  ;;  %v914_v5 = vsel %vm596_vm6, %v905_v49, %v907_v35 }
 0x242   : > { %1038 = vmatprep.subr.bf16.mxu1 %v964_v17  ;;  %v916_v13 = vmul.f32 %v914_v5, %v2740_v63  ;;  %v917_v3 = vmul.f32 %v913_v37, %v2716_v40 }
 0x243   : > { %1039 = vmatpush1.bf16.msra.mxu1 %v963_v36 }
 0x244   : > { %v925_v20 = vpop.permute.xlu0 %924  ;;  %v911_v33 = vpop.permute.xlu1 %910 }
 0x245   : > { %v912_v0 = vsel %vm596_vm6, %v909_v14, %v911_v33  ;;  %v915_v46 = vsel %vm596_vm6, %v911_v33, %v905_v49 }
 0x246   : > { %v918_v6 = vmul.f32 %v912_v0, %v2721_v47  ;;  %v919_v36 = vmul.f32 %v915_v46, %v2713_v39 }
 0x248   : > { %v923_v16 = vpop.permute.xlu1 %922  ;;  %v937_v22 = vpop.permute.xlu0 %936 }
 0x249   : > { %v929_v1 = vsel %vm629_vm5, %v923_v16, %v925_v20  ;;  %v930_v8 = vsel %vm629_vm5, %v921_v28, %v923_v16 }
 0x24a   : > { %v932_v2 = vmul.f32 %v930_v8, %v2726_v48  ;;  %v933_v12 = vmul.f32 %v929_v1, %v2734_v54  ;;  %v2296_v1 = vld [vmem:[%s2789_s20 + $0x8] sm:$0xff] }
 0x24c   : > { %v965_v31 = vpack.c.bf16 %v932_v2, %v916_v13  ;;  %v927_v32 = vpop.permute.xlu1 %926  ;;  %v966_v7 = vpack.c.bf16 %v933_v12, %v917_v3  ;;  %v941_v49 = vpop.permute.xlu0 %940 }
 0x24d   : > { %v928_v23 = vsel %vm629_vm5, %v925_v20, %v927_v32  ;;  %v931_v15 = vsel %vm629_vm5, %v927_v32, %v921_v28  ;;  %v952_v32 = vpack.c.bf16 %v2296_v1, %v2296_v1 }
 0x24e   : > { %v934_v35 = vmul.f32 %v928_v23, %v2737_v59  ;;  %v935_v14 = vmul.f32 %v931_v15, %v2731_v50  ;;  %999 = vmatprep.subr.bf16.mxu0 %v966_v7 }
 0x24f   : > { %1000 = vmatpush1.bf16.msra.mxu0 %v965_v31 }
 0x250   : > { %v967_v17 = vpack.c.bf16 %v934_v35, %v918_v6  ;;  %v939_v33 = vpop.permute.xlu1 %938  ;;  %v968_v37 = vpack.c.bf16 %v935_v14, %v919_v36 }
 0x251   : > { %v945_v20 = vsel %vm662_vm7, %v939_v33, %v941_v49  ;;  %v946_v28 = vsel %vm662_vm7, %v937_v22, %v939_v33 }
 0x252   : > { %v948_v5 = vmul.f32 %v2764_v27, %v946_v28  ;;  %v949_v16 = vmul.f32 %v2777_v41, %v945_v20  ;;  %1040 = vmatprep.subr.bf16.mxu1 %v968_v37 }
 0x253   : > { %1041 = vmatpush1.bf16.msra.mxu1 %v967_v17 }
 0x254   : > { %v969_v8 = vpack.c.bf16 %v948_v5, %v948_v5  ;;  %v970_v13 = vpack.c.bf16 %v949_v16, %v949_v16  ;;  %v943_v3 = vpop.permute.xlu1 %942 }
 0x255   : > { %v944_v2 = vsel %vm662_vm7, %v941_v49, %v943_v3  ;;  %v947_v12 = vsel %vm662_vm7, %v943_v3, %v937_v22 }
 0x256   : > { %v950_v0 = vmul.f32 %v2782_v42, %v944_v2  ;;  %v951_v46 = vmul.f32 %v2772_v38, %v947_v12  ;;  %2298 = vmatprep.subr.msk.bf16.mxu0 %vm717_vm8, %v970_v13  ;;  %v982_v31 = vsel %vm717_vm8, %v969_v8, 0  ;;  %v2303_v2 = vld [vmem:[%s2526_s19 + $0x10] sm:$0xff]  ;;  %s380_s19 = scalar_lea.vmem %s3796_s6, %s2442_s27 }
 0x257   : > { %1002 = vmatpush1.bf16.msra.mxu0 %v982_v31 }
 0x258   : > { %v971_v7 = vpack.c.bf16 %v950_v0, %v950_v0  ;;  %v972_v23 = vpack.c.bf16 %v951_v46, %v951_v46 }
 0x25a   : > { %2299 = vmatmul.mubr.msk.bf16.vlgmr.msra.gmra.mrb[4].mxu0 %vm713_vm9, %v952_v32  ;;  %2300 = vmatprep.subr.msk.bf16.mxu1 %vm717_vm8, %v972_v23  ;;  %v988_v15 = vsel %vm717_vm8, %v971_v7, 0 }
 0x25b   : > { %1043 = vmatpush1.bf16.msra.mxu1 %v988_v15  ;;  %1288 = vmatprep.mubr.bf16.mxu0 %v2385_v4 }
 0x25d   : > { %v976_v22 = vpop.permute.xlu0 %975 }
 0x25e   : > { %2301 = vmatmul.mubr.msk.bf16.vlgmr.msra.gmra.mrb[4].mxu1 %vm713_vm9, %v952_v32 }
 0x25f   : > { %1329 = vmatprep.mubr.bf16.mxu1 %v2385_v4 }
 0x32d   : > { %v1027_v6 = vpop.f32.mrb[4].mxu0 }
 0x32e   : > { %v1028_v36 = vadd.f32 %v1027_v6, %v976_v22  ;;  %v1029_v35 = vpop.f32.mrb[5].mxu0 }
 0x32f   : > { %v1030_v14 = vadd.f32 %v1029_v35, %v976_v22  ;;  %v1031_v49 = vpop.f32.mrb[6].mxu0 }
 0x330   : > { %v2995_v17 = vmax.f32 %v1028_v36, 0.0  ;;  %v1032_v33 = vpop.f32.mrb[7].mxu0 }
 0x331   : > { %v2997_v37 = vmax.f32 %v1030_v14, 0.0  ;;  %v1068_v20 = vpop.f32.mrb[4].mxu1 }
 0x332   : > { %v1069_v28 = vadd.f32 %v1068_v20, %v976_v22  ;;  %v1070_v5 = vpop.f32.mrb[5].mxu1  ;;  %1083 = vrot.lane.b32.xlu1 %v2995_v17, %s2378_s8 }
 0x333   : > { %v1071_v16 = vadd.f32 %v1070_v5, %v976_v22  ;;  %v1072_v1 = vpop.f32.mrb[6].mxu1  ;;  %1085 = vrot.lane.b32.xlu0 %v2997_v37, %s2378_s8 }
 0x334   : > { %v3003_v8 = vmax.f32 %v1069_v28, 0.0  ;;  %v1073_v13 = vpop.f32.mrb[7].mxu1 }
 0x335   : > { %v3005_v3 = vmax.f32 %v1071_v16, 0.0 }
 0x336   : > { %1087 = vrot.lane.b32.xlu1 %v3003_v8, %s2378_s8 }
 0x337   : > { %1089 = vrot.lane.b32.xlu0 %v3005_v3, %s2378_s8 }
 0x33a   : > { %1099 = vrot.lane.b32.xlu1 %v2995_v17, %s2379_s9 }
 0x33b   : > { %1101 = vrot.lane.b32.xlu0 %v2997_v37, %s2379_s9 }
 0x33e   : > { %1103 = vrot.lane.b32.xlu1 %v3003_v8, %s2379_s9 }
 0x33f   : > { %1105 = vrot.lane.b32.xlu0 %v3005_v3, %s2379_s9 }
 0x342   : > { %1115 = vrot.lane.b32.xlu1 %v2995_v17, %s2380_s10 }
 0x343   : > { %1117 = vrot.lane.b32.xlu0 %v2997_v37, %s2380_s10 }
 0x346   : > { %1119 = vrot.lane.b32.xlu1 %v3003_v8, %s2380_s10 }
 0x347   : > { %1121 = vrot.lane.b32.xlu0 %v3005_v3, %s2380_s10 }
 0x34a   : > { %1131 = vrot.lane.b32.xlu1 %v2995_v17, %s2381_s11 }
 0x34b   : > { %1133 = vrot.lane.b32.xlu0 %v2997_v37, %s2381_s11 }
 0x34e   : > { %1135 = vrot.lane.b32.xlu1 %v3003_v8, %s2381_s11 }
 0x34f   : > { %1137 = vrot.lane.b32.xlu0 %v3005_v3, %s2381_s11 }
 0x352   : > { %1151 = vrot.lane.b32.xlu1 %v2995_v17, %s2382_s12 }
 0x353   : > { %1153 = vrot.lane.b32.xlu0 %v2997_v37, %s2382_s12 }
 0x356   : > { %1155 = vrot.lane.b32.xlu1 %v3003_v8, %s2382_s12 }
 0x357   : > { %1157 = vrot.lane.b32.xlu0 %v3005_v3, %s2382_s12 }
 0x35a   : > { %1167 = vrot.lane.b32.xlu1 %v2995_v17, %s2383_s13 }
 0x35b   : > { %1169 = vrot.lane.b32.xlu0 %v2997_v37, %s2383_s13 }
 0x35e   : > { %1171 = vrot.lane.b32.xlu1 %v3003_v8, %s2383_s13 }
 0x35f   : > { %1173 = vrot.lane.b32.xlu0 %v3005_v3, %s2383_s13 }
 0x362   : > { %1183 = vrot.lane.b32.xlu1 %v2995_v17, %s2384_s14 }
 0x363   : > { %1185 = vrot.lane.b32.xlu0 %v2997_v37, %s2384_s14 }
 0x366   : > { %1187 = vrot.lane.b32.xlu1 %v3003_v8, %s2384_s14 }
 0x367   : > { %1189 = vrot.lane.b32.xlu0 %v3005_v3, %s2384_s14 }
 0x36a   : > { %1199 = vrot.lane.b32.xlu1 %v2995_v17, %s2386_s15 }
 0x36b   : > { %1201 = vrot.lane.b32.xlu0 %v2997_v37, %s2386_s15 }
 0x36e   : > { %1203 = vrot.lane.b32.xlu1 %v3003_v8, %s2386_s15 }
 0x36f   : > { %1205 = vrot.lane.b32.xlu0 %v3005_v3, %s2386_s15 }
 0x372   : > { %1238 = vperm.xlu1 %2349, %v2303_v2  }
 0x3a4   : > { %v1084_v12 = vpop.permute.xlu1 %1083 }
 0x3a5   : > { %v1086_v0 = vpop.permute.xlu0 %1085 }
 0x3a6   : > { %v1093_v32 = vsel %vm411_vm0, %v1084_v12, %v1086_v0 }
 0x3a7   : > { %v1096_v22 = vmul.f32 %v1093_v32, %v2557_v18 }
 0x3a8   : > { %v1088_v46 = vpop.permute.xlu1 %1087 }
 0x3a9   : > { %v1090_v31 = vpop.permute.xlu0 %1089  ;;  %v1092_v49 = vsel %vm411_vm0, %v1086_v0, %v1088_v46 }
 0x3aa   : > { %v1091_v36 = vsel %vm411_vm0, %v1088_v46, %v1090_v31  ;;  %v1094_v35 = vsel %vm411_vm0, %v1090_v31, %v1084_v12  ;;  %v1097_v46 = vmul.f32 %v1092_v49, %v2586_v30 }
 0x3ab   : > { %v1095_v13 = vmul.f32 %v1094_v35, %v2570_v24  ;;  %v1098_v2 = vmul.f32 %v1091_v36, %v2576_v26 }
 0x3ac   : > { %v1100_v7 = vpop.permute.xlu1 %1099 }
 0x3ad   : > { %v1102_v23 = vpop.permute.xlu0 %1101 }
 0x3ae   : > { %v1109_v15 = vsel %vm444_vm1, %v1100_v7, %v1102_v23 }
 0x3af   : > { %v1112_v6 = vmul.f32 %v1109_v15, %v2560_v19 }
 0x3b0   : > { %v1104_v14 = vpop.permute.xlu1 %1103 }
 0x3b1   : > { %v1108_v33 = vsel %vm444_vm1, %v1102_v23, %v1104_v14  ;;  %v1106_v20 = vpop.permute.xlu0 %1105  ;;  %v1217_v28 = vpack.c.bf16 %v1112_v6, %v1096_v22 }
 0x3b2   : > { %v1113_v5 = vmul.f32 %v1108_v33, %v2593_v34  ;;  %v1107_v16 = vsel %vm444_vm1, %v1104_v14, %v1106_v20  ;;  %v1110_v1 = vsel %vm444_vm1, %v1106_v20, %v1100_v7 }
 0x3b3   : > { %v1111_v12 = vmul.f32 %v1110_v1, %v2573_v25  ;;  %v1114_v0 = vmul.f32 %v1107_v16, %v2583_v29  ;;  %1256 = vmatprep.subr.bf16.mxu0 %v1217_v28 }
 0x3b4   : > { %v1116_v31 = vpop.permute.xlu1 %1115  ;;  %v1218_v22 = vpack.c.bf16 %v1113_v5, %v1097_v46 }
 0x3b5   : > { %v1216_v32 = vpack.c.bf16 %v1111_v12, %v1095_v13  ;;  %v1118_v23 = vpop.permute.xlu0 %1117  ;;  %v1219_v15 = vpack.c.bf16 %v1114_v0, %v1098_v2 }
 0x3b6   : > { %v1125_v36 = vsel %vm477_vm2, %v1116_v31, %v1118_v23 }
 0x3b7   : > { %1257 = vmatpush1.bf16.msra.mxu0 %v1216_v32  ;;  %1297 = vmatprep.subr.bf16.mxu1 %v1219_v15  ;;  %v1128_v49 = vmul.f32 %v1125_v36, %v2614_v57 }
 0x3b8   : > { %1298 = vmatpush1.bf16.msra.mxu1 %v1218_v22  ;;  %v1120_v7 = vpop.permute.xlu1 %1119 }
 0x3b9   : > { %v1122_v6 = vpop.permute.xlu0 %1121  ;;  %v1124_v1 = vsel %vm477_vm2, %v1118_v23, %v1120_v7 }
 0x3ba   : > { %v1123_v28 = vsel %vm477_vm2, %v1120_v7, %v1122_v6  ;;  %v1126_v5 = vsel %vm477_vm2, %v1122_v6, %v1116_v31  ;;  %v1129_v7 = vmul.f32 %v1124_v1, %v2625_v61 }
 0x3bb   : > { %v1127_v15 = vmul.f32 %v1126_v5, %v2622_v60  ;;  %v1130_v31 = vmul.f32 %v1123_v28, %v2628_v62  ;;  %v1147_v28 = vmul.f32 %v2995_v17, %v2671_v45  ;;  %v1149_v17 = vmul.f32 %v3003_v8, %v2674_v51 }
 0x3bc   : > { %v1132_v35 = vpop.permute.xlu1 %1131 }
 0x3bd   : > { %v1134_v14 = vpop.permute.xlu0 %1133 }
 0x3be   : > { %v1141_v33 = vsel %vm510_vm3, %v1132_v35, %v1134_v14 }
 0x3bf   : > { %v1144_v20 = vmul.f32 %v1141_v33, %v2617_v58 }
 0x3c0   : > { %v1136_v16 = vpop.permute.xlu1 %1135 }
 0x3c1   : > { %v1140_v13 = vsel %vm510_vm3, %v1134_v14, %v1136_v16  ;;  %v1138_v2 = vpop.permute.xlu0 %1137  ;;  %v1221_v12 = vpack.c.bf16 %v1144_v20, %v1128_v49 }
 0x3c2   : > { %v1145_v0 = vmul.f32 %v1140_v13, %v2638_v11  ;;  %v1139_v46 = vsel %vm510_vm3, %v1136_v16, %v1138_v2  ;;  %v1142_v32 = vsel %vm510_vm3, %v1138_v2, %v1132_v35 }
 0x3c3   : > { %v1143_v22 = vmul.f32 %v1142_v32, %v2635_v9  ;;  %v1146_v23 = vmul.f32 %v1139_v46, %v2645_v21  ;;  %1258 = vmatprep.subr.bf16.mxu0 %v1221_v12 }
 0x3c4   : > { %v1152_v6 = vpop.permute.xlu1 %1151  ;;  %v1222_v49 = vpack.c.bf16 %v1145_v0, %v1129_v7  ;;  %v1148_v0 = vmul.f32 %v2997_v37, %v2665_v43 }
 0x3c5   : > { %v1220_v36 = vpack.c.bf16 %v1143_v22, %v1127_v15  ;;  %v1154_v14 = vpop.permute.xlu0 %1153  ;;  %v1223_v33 = vpack.c.bf16 %v1146_v23, %v1130_v31  ;;  %v1150_v15 = vmul.f32 %v3005_v3, %v2668_v44 }
 0x3c6   : > { %v1161_v20 = vsel %vm563_vm4, %v1152_v6, %v1154_v14 }
 0x3c7   : > { %1259 = vmatpush1.bf16.msra.mxu0 %v1220_v36  ;;  %1299 = vmatprep.subr.bf16.mxu1 %v1223_v33  ;;  %v1163_v5 = vmul.f32 %v1161_v20, %v2677_v52 }
 0x3c8   : > { %1300 = vmatpush1.bf16.msra.mxu1 %v1222_v49  ;;  %v1156_v35 = vpop.permute.xlu1 %1155 }
 0x3c9   : > { %v1160_v16 = vsel %vm563_vm4, %v1154_v14, %v1156_v35  ;;  %v1158_v1 = vpop.permute.xlu0 %1157  ;;  %v1224_v23 = vpack.c.bf16 %v1163_v5, %v1147_v28 }
 0x3ca   : > { %v1164_v13 = vmul.f32 %v1160_v16, %v2685_v55  ;;  %v1159_v2 = vsel %vm563_vm4, %v1156_v35, %v1158_v1  ;;  %v1162_v12 = vsel %vm563_vm4, %v1158_v1, %v1152_v6 }
 0x3cb   : > { %v1165_v46 = vmul.f32 %v1159_v2, %v2688_v56  ;;  %v1166_v32 = vmul.f32 %v1162_v12, %v2680_v53 }
 0x3cc   : > { %v1168_v31 = vpop.permute.xlu1 %1167  ;;  %v1225_v22 = vpack.c.bf16 %v1164_v13, %v1148_v0 }
 0x3cd   : > { %v1226_v7 = vpack.c.bf16 %v1165_v46, %v1149_v17  ;;  %v1170_v36 = vpop.permute.xlu0 %1169  ;;  %v1227_v14 = vpack.c.bf16 %v1166_v32, %v1150_v15 }
 0x3ce   : > { %1260 = vmatprep.subr.bf16.mxu0 %v1225_v22  ;;  %v1177_v49 = vsel %vm596_vm6, %v1168_v31, %v1170_v36 }
 0x3cf   : > { %1261 = vmatpush1.bf16.msra.mxu0 %v1224_v23  ;;  %1301 = vmatprep.subr.bf16.mxu1 %v1227_v14  ;;  %v1179_v16 = vmul.f32 %v1177_v49, %v2740_v63 }
 0x3d0   : > { %1302 = vmatpush1.bf16.msra.mxu1 %v1226_v7  ;;  %v1172_v37 = vpop.permute.xlu1 %1171 }
 0x3d1   : > { %v1174_v6 = vpop.permute.xlu0 %1173  ;;  %v1176_v20 = vsel %vm596_vm6, %v1170_v36, %v1172_v37 }
 0x3d2   : > { %v1175_v35 = vsel %vm596_vm6, %v1172_v37, %v1174_v6  ;;  %v1178_v28 = vsel %vm596_vm6, %v1174_v6, %v1168_v31  ;;  %v1180_v12 = vmul.f32 %v1176_v20, %v2716_v40 }
 0x3d3   : > { %v1181_v32 = vmul.f32 %v1175_v35, %v2721_v47  ;;  %v1182_v15 = vmul.f32 %v1178_v28, %v2713_v39 }
 0x3d4   : > { %v1184_v8 = vpop.permute.xlu1 %1183 }
 0x3d5   : > { %v1186_v33 = vpop.permute.xlu0 %1185 }
 0x3d6   : > { %v1193_v3 = vsel %vm629_vm5, %v1184_v8, %v1186_v33 }
 0x3d7   : > { %v1195_v1 = vmul.f32 %v1193_v3, %v2726_v48 }
 0x3d8   : > { %v1188_v5 = vpop.permute.xlu1 %1187 }
 0x3d9   : > { %v1192_v13 = vsel %vm629_vm5, %v1186_v33, %v1188_v5  ;;  %v1190_v2 = vpop.permute.xlu0 %1189  ;;  %v1228_v36 = vpack.c.bf16 %v1195_v1, %v1179_v16 }
 0x3da   : > { %v1196_v0 = vmul.f32 %v1192_v13, %v2734_v54  ;;  %v1191_v17 = vsel %vm629_vm5, %v1188_v5, %v1190_v2  ;;  %v1194_v46 = vsel %vm629_vm5, %v1190_v2, %v1184_v8  ;;  %v2302_v13 = vld [vmem:[%s2789_s20 + $0x10] sm:$0xff]  ;;  %s3378_s20 = scalar_lea.vmem %s3794_s4, %s2330_s25 }
 0x3db   : > { %v1197_v31 = vmul.f32 %v1191_v17, %v2737_v59  ;;  %v1198_v22 = vmul.f32 %v1194_v46, %v2731_v50  ;;  %v1215_v46 = vpack.c.bf16 %v2302_v13, %v2302_v13 }
 0x3dc   : > { %v1200_v23 = vpop.permute.xlu1 %1199  ;;  %v1229_v7 = vpack.c.bf16 %v1196_v0, %v1180_v12 }
 0x3dd   : > { %v1230_v14 = vpack.c.bf16 %v1197_v31, %v1181_v32  ;;  %v1202_v37 = vpop.permute.xlu0 %1201  ;;  %v1231_v6 = vpack.c.bf16 %v1198_v22, %v1182_v15 }
 0x3de   : > { %v1209_v33 = vsel %vm662_vm7, %v1200_v23, %v1202_v37  ;;  %1262 = vmatprep.subr.bf16.mxu0 %v1229_v7 }
 0x3df   : > { %v1211_v8 = vmul.f32 %v2764_v27, %v1209_v33  ;;  %1263 = vmatpush1.bf16.msra.mxu0 %v1228_v36  ;;  %1303 = vmatprep.subr.bf16.mxu1 %v1231_v6 }
 0x3e0   : > { %1304 = vmatpush1.bf16.msra.mxu1 %v1230_v14  ;;  %v1204_v49 = vpop.permute.xlu1 %1203 }
 0x3e1   : > { %v1208_v3 = vsel %vm662_vm7, %v1202_v37, %v1204_v49  ;;  %v1206_v20 = vpop.permute.xlu0 %1205  ;;  %v1232_v35 = vpack.c.bf16 %v1211_v8, %v1211_v8 }
 0x3e2   : > { %v1212_v28 = vmul.f32 %v2777_v41, %v1208_v3  ;;  %v1207_v5 = vsel %vm662_vm7, %v1204_v49, %v1206_v20  ;;  %v1210_v16 = vsel %vm662_vm7, %v1206_v20, %v1200_v23 }
 0x3e3   : > { %v1213_v1 = vmul.f32 %v2782_v42, %v1207_v5  ;;  %v1214_v27 = vmul.f32 %v2772_v38, %v1210_v16  ;;  %v1245_v17 = vsel %vm717_vm8, %v1232_v35, 0  ;;  %v1347_v35 = vld [vmem:[%s3266_s28] sm:$0xff] }
 0x3e4   : > { %v1233_v2 = vpack.c.bf16 %v1212_v28, %v1212_v28 }
 0x3e5   : > { %v1234_v12 = vpack.c.bf16 %v1213_v1, %v1213_v1  ;;  %v1235_v0 = vpack.c.bf16 %v1214_v27, %v1214_v27 }
 0x3e6   : > { %2304 = vmatprep.subr.msk.bf16.mxu0 %vm717_vm8, %v1233_v2 }
 0x3e7   : > { %1265 = vmatpush1.bf16.msra.mxu0 %v1245_v17  ;;  %2306 = vmatprep.subr.msk.bf16.mxu1 %vm717_vm8, %v1235_v0  ;;  %v1251_v41 = vsel %vm717_vm8, %v1234_v12, 0 }
 0x3e8   : > { %1306 = vmatpush1.bf16.msra.mxu1 %v1251_v41 }
 0x3ea   : > { %2305 = vmatmul.mubr.msk.bf16.vlgmr.msra.gmra.mrb[8].mxu0 %vm713_vm9, %v1215_v46 }
 0x3eb   : > { %2307 = vmatmul.mubr.msk.bf16.vlgmr.msra.gmra.mrb[8].mxu1 %vm713_vm9, %v1215_v46  ;;  %1553 = vmatprep.mubr.bf16.mxu0 %v2385_v4 }
 0x3ec   : > { %1594 = vmatprep.mubr.bf16.mxu1 %v2385_v4 }
 0x3f1   : > { %v1239_v38 = vpop.permute.xlu1 %1238 }
 0x4bd   : > { %v1290_v42 = vpop.f32.mrb[8].mxu0 }
 0x4be   : > { %v1291_v32 = vadd.f32 %v1290_v42, %v1239_v38  ;;  %v1292_v15 = vpop.f32.mrb[9].mxu0  ;;  %v1331_v31 = vpop.f32.mrb[8].mxu1 }
 0x4bf   : > { %v1293_v22 = vadd.f32 %v1292_v15, %v1239_v38  ;;  %v1332_v23 = vadd.f32 %v1331_v31, %v1239_v38  ;;  %v1294_v7 = vpop.f32.mrb[10].mxu0  ;;  %v1333_v36 = vpop.f32.mrb[9].mxu1 }
 0x4c0   : > { %2350 = vtanh.f32 %v1291_v32  ;;  %v1334_v14 = vadd.f32 %v1333_v36, %v1239_v38  ;;  %v1295_v37 = vpop.f32.mrb[11].mxu0  ;;  %v1335_v6 = vpop.f32.mrb[10].mxu1 }
 0x4c1   : > { %2352 = vtanh.f32 %v1293_v22  ;;  %v1336_v33 = vpop.f32.mrb[11].mxu1 }
 0x4c2   : > { %2354 = vtanh.f32 %v1332_v23 }
 0x4c3   : > { %2356 = vtanh.f32 %v1334_v14 }
 0x4ca   : > { %v3185_v8 = vpop.eup %2350 }
 0x4cb   : > { %v3187_v49 = vpop.eup %2352  ;;  %1342 = vst [vmem:[%s380_s19] sm:$0xff] %v3185_v8  ;;  %1348 = vrot.lane.b32.xlu0 %v3185_v8, %s2378_s8 }
 0x4cc   : > { %v3192_v3 = vpop.eup %2354  ;;  %1343 = vst [vmem:[%s380_s19 + $0x8] sm:$0xff] %v3187_v49  ;;  %1350 = vrot.lane.b32.xlu1 %v3187_v49, %s2378_s8 }
 0x4cd   : > { %v3197_v20 = vpop.eup %2356  ;;  %1344 = vst [vmem:[%s380_s19 + $0x10] sm:$0xff] %v3192_v3 }
 0x4ce   : > { %1345 = vst [vmem:[%s380_s19 + $0x18] sm:$0xff] %v3197_v20 }
 0x4cf   : > { %1352 = vrot.lane.b32.xlu0 %v3192_v3, %s2378_s8 }
 0x4d0   : > { %1354 = vrot.lane.b32.xlu1 %v3197_v20, %s2378_s8 }
 0x4d3   : > { %1364 = vrot.lane.b32.xlu0 %v3185_v8, %s2379_s9 }
 0x4d4   : > { %1366 = vrot.lane.b32.xlu1 %v3187_v49, %s2379_s9 }
 0x4d7   : > { %1368 = vrot.lane.b32.xlu0 %v3192_v3, %s2379_s9 }
 0x4d8   : > { %1370 = vrot.lane.b32.xlu1 %v3197_v20, %s2379_s9 }
 0x4db   : > { %1380 = vrot.lane.b32.xlu0 %v3185_v8, %s2380_s10 }
 0x4dc   : > { %1382 = vrot.lane.b32.xlu1 %v3187_v49, %s2380_s10 }
 0x4df   : > { %1384 = vrot.lane.b32.xlu0 %v3192_v3, %s2380_s10 }
 0x4e0   : > { %1386 = vrot.lane.b32.xlu1 %v3197_v20, %s2380_s10 }
 0x4e3   : > { %1396 = vrot.lane.b32.xlu0 %v3185_v8, %s2381_s11 }
 0x4e4   : > { %1398 = vrot.lane.b32.xlu1 %v3187_v49, %s2381_s11 }
 0x4e7   : > { %1400 = vrot.lane.b32.xlu0 %v3192_v3, %s2381_s11 }
 0x4e8   : > { %1402 = vrot.lane.b32.xlu1 %v3197_v20, %s2381_s11 }
 0x4eb   : > { %1416 = vrot.lane.b32.xlu0 %v3185_v8, %s2382_s12 }
 0x4ec   : > { %1418 = vrot.lane.b32.xlu1 %v3187_v49, %s2382_s12 }
 0x4ef   : > { %1420 = vrot.lane.b32.xlu0 %v3192_v3, %s2382_s12 }
 0x4f0   : > { %1422 = vrot.lane.b32.xlu1 %v3197_v20, %s2382_s12 }
 0x4f3   : > { %1432 = vrot.lane.b32.xlu0 %v3185_v8, %s2383_s13 }
 0x4f4   : > { %1434 = vrot.lane.b32.xlu1 %v3187_v49, %s2383_s13 }
 0x4f7   : > { %1436 = vrot.lane.b32.xlu0 %v3192_v3, %s2383_s13 }
 0x4f8   : > { %1438 = vrot.lane.b32.xlu1 %v3197_v20, %s2383_s13 }
 0x4fb   : > { %1448 = vrot.lane.b32.xlu0 %v3185_v8, %s2384_s14 }
 0x4fc   : > { %1450 = vrot.lane.b32.xlu1 %v3187_v49, %s2384_s14 }
 0x4ff   : > { %1452 = vrot.lane.b32.xlu0 %v3192_v3, %s2384_s14 }
 0x500   : > { %1454 = vrot.lane.b32.xlu1 %v3197_v20, %s2384_s14 }
 0x503   : > { %1464 = vrot.lane.b32.xlu0 %v3185_v8, %s2386_s15 }
 0x504   : > { %1466 = vrot.lane.b32.xlu1 %v3187_v49, %s2386_s15 }
 0x507   : > { %1468 = vrot.lane.b32.xlu0 %v3192_v3, %s2386_s15 }
 0x508   : > { %1470 = vrot.lane.b32.xlu1 %v3197_v20, %s2386_s15 }
 0x50b   : > { %1503 = vperm.xlu0 %2348, %v1347_v35  }
 0x53d   : > { %v1349_v28 = vpop.permute.xlu0 %1348 }
 0x53e   : > { %v1351_v5 = vpop.permute.xlu1 %1350 }
 0x53f   : > { %v1358_v27 = vsel %vm411_vm0, %v1349_v28, %v1351_v5 }
 0x540   : > { %v1361_v0 = vmul.f32 %v1358_v27, %v2557_v18 }
 0x541   : > { %v1353_v16 = vpop.permute.xlu0 %1352 }
 0x542   : > { %v1355_v1 = vpop.permute.xlu1 %1354  ;;  %v1357_v42 = vsel %vm411_vm0, %v1351_v5, %v1353_v16 }
 0x543   : > { %v1356_v46 = vsel %vm411_vm0, %v1353_v16, %v1355_v1  ;;  %v1359_v41 = vsel %vm411_vm0, %v1355_v1, %v1349_v28  ;;  %v1362_v33 = vmul.f32 %v1357_v42, %v2586_v30 }
 0x544   : > { %v1360_v36 = vmul.f32 %v1359_v41, %v2570_v24  ;;  %v1363_v14 = vmul.f32 %v1356_v46, %v2576_v26 }
 0x545   : > { %v1365_v13 = vpop.permute.xlu0 %1364 }
 0x546   : > { %v1367_v2 = vpop.permute.xlu1 %1366 }
 0x547   : > { %v1374_v12 = vsel %vm444_vm1, %v1365_v13, %v1367_v2 }
 0x548   : > { %v1377_v17 = vmul.f32 %v1374_v12, %v2560_v19 }
 0x549   : > { %v1369_v38 = vpop.permute.xlu0 %1368 }
 0x54a   : > { %v1373_v32 = vsel %vm444_vm1, %v1367_v2, %v1369_v38  ;;  %v1371_v15 = vpop.permute.xlu1 %1370  ;;  %v1482_v31 = vpack.c.bf16 %v1377_v17, %v1361_v0 }
 0x54b   : > { %v1378_v22 = vmul.f32 %v1373_v32, %v2593_v34  ;;  %v1372_v23 = vsel %vm444_vm1, %v1369_v38, %v1371_v15  ;;  %v1375_v7 = vsel %vm444_vm1, %v1371_v15, %v1365_v13 }
 0x54c   : > { %v1376_v37 = vmul.f32 %v1375_v7, %v2573_v25  ;;  %v1379_v6 = vmul.f32 %v1372_v23, %v2583_v29  ;;  %1521 = vmatprep.subr.bf16.mxu0 %v1482_v31 }
 0x54d   : > { %v1381_v35 = vpop.permute.xlu0 %1380  ;;  %v1483_v1 = vpack.c.bf16 %v1378_v22, %v1362_v33 }
 0x54e   : > { %v1481_v28 = vpack.c.bf16 %v1376_v37, %v1360_v36  ;;  %v1383_v5 = vpop.permute.xlu1 %1382  ;;  %v1484_v16 = vpack.c.bf16 %v1379_v6, %v1363_v14 }
 0x54f   : > { %v1390_v2 = vsel %vm477_vm2, %v1381_v35, %v1383_v5 }
 0x550   : > { %1522 = vmatpush1.bf16.msra.mxu0 %v1481_v28  ;;  %1562 = vmatprep.subr.bf16.mxu1 %v1484_v16  ;;  %v1393_v46 = vmul.f32 %v1390_v2, %v2614_v57 }
 0x551   : > { %1563 = vmatpush1.bf16.msra.mxu1 %v1483_v1  ;;  %v1385_v27 = vpop.permute.xlu0 %1384 }
 0x552   : > { %v1387_v13 = vpop.permute.xlu1 %1386  ;;  %v1389_v15 = vsel %vm477_vm2, %v1383_v5, %v1385_v27 }
 0x553   : > { %v1388_v38 = vsel %vm477_vm2, %v1385_v27, %v1387_v13  ;;  %v1391_v42 = vsel %vm477_vm2, %v1387_v13, %v1381_v35  ;;  %v1394_v28 = vmul.f32 %v1389_v15, %v2625_v61  ;;  %v1413_v15 = vmul.f32 %v3187_v49, %v2665_v43 }
 0x554   : > { %v1392_v37 = vmul.f32 %v1391_v42, %v2622_v60  ;;  %v1395_v6 = vmul.f32 %v1388_v38, %v2628_v62 }
 0x555   : > { %v1397_v12 = vpop.permute.xlu0 %1396 }
 0x556   : > { %v1399_v0 = vpop.permute.xlu1 %1398 }
 0x557   : > { %v1406_v17 = vsel %vm510_vm3, %v1397_v12, %v1399_v0 }
 0x558   : > { %v1409_v41 = vmul.f32 %v1406_v17, %v2617_v58 }
 0x559   : > { %v1401_v32 = vpop.permute.xlu0 %1400 }
 0x55a   : > { %v1405_v31 = vsel %vm510_vm3, %v1399_v0, %v1401_v32  ;;  %v1403_v22 = vpop.permute.xlu1 %1402  ;;  %v1486_v23 = vpack.c.bf16 %v1409_v41, %v1393_v46  ;;  %v1412_v0 = vmul.f32 %v3185_v8, %v2671_v45  ;;  %v1414_v8 = vmul.f32 %v3192_v3, %v2674_v51 }
 0x55b   : > { %v1410_v7 = vmul.f32 %v1405_v31, %v2638_v11  ;;  %v1404_v36 = vsel %vm510_vm3, %v1401_v32, %v1403_v22  ;;  %v1407_v14 = vsel %vm510_vm3, %v1403_v22, %v1397_v12 }
 0x55c   : > { %v1408_v33 = vmul.f32 %v1407_v14, %v2635_v9  ;;  %v1411_v35 = vmul.f32 %v1404_v36, %v2645_v21  ;;  %1523 = vmatprep.subr.bf16.mxu0 %v1486_v23  ;;  %v1415_v23 = vmul.f32 %v3197_v20, %v2668_v44 }
 0x55d   : > { %v1417_v5 = vpop.permute.xlu0 %1416  ;;  %v1487_v13 = vpack.c.bf16 %v1410_v7, %v1394_v28 }
 0x55e   : > { %v1485_v16 = vpack.c.bf16 %v1408_v33, %v1392_v37  ;;  %v1419_v1 = vpop.permute.xlu1 %1418  ;;  %v1488_v27 = vpack.c.bf16 %v1411_v35, %v1395_v6 }
 0x55f   : > { %v1426_v2 = vsel %vm563_vm4, %v1417_v5, %v1419_v1 }
 0x560   : > { %1524 = vmatpush1.bf16.msra.mxu0 %v1485_v16  ;;  %1564 = vmatprep.subr.bf16.mxu1 %v1488_v27  ;;  %v1428_v17 = vmul.f32 %v1426_v2, %v2677_v52 }
 0x561   : > { %1565 = vmatpush1.bf16.msra.mxu1 %v1487_v13  ;;  %v1421_v12 = vpop.permute.xlu0 %1420 }
 0x562   : > { %v1425_v46 = vsel %vm563_vm4, %v1419_v1, %v1421_v12  ;;  %v1423_v41 = vpop.permute.xlu1 %1422  ;;  %v1489_v14 = vpack.c.bf16 %v1428_v17, %v1412_v0 }
 0x563   : > { %v1429_v38 = vmul.f32 %v1425_v46, %v2685_v55  ;;  %v1424_v42 = vsel %vm563_vm4, %v1421_v12, %v1423_v41  ;;  %v1427_v32 = vsel %vm563_vm4, %v1423_v41, %v1417_v5 }
 0x564   : > { %v1430_v31 = vmul.f32 %v1424_v42, %v2688_v56  ;;  %v1431_v22 = vmul.f32 %v1427_v32, %v2680_v53 }
 0x565   : > { %v1433_v7 = vpop.permute.xlu0 %1432  ;;  %v1490_v36 = vpack.c.bf16 %v1429_v38, %v1413_v15 }
 0x566   : > { %v1491_v37 = vpack.c.bf16 %v1430_v31, %v1414_v8  ;;  %v1435_v6 = vpop.permute.xlu1 %1434  ;;  %v1492_v33 = vpack.c.bf16 %v1431_v22, %v1415_v23 }
 0x567   : > { %1525 = vmatprep.subr.bf16.mxu0 %v1490_v36  ;;  %v1442_v5 = vsel %vm596_vm6, %v1433_v7, %v1435_v6 }
 0x568   : > { %1526 = vmatpush1.bf16.msra.mxu0 %v1489_v14  ;;  %1566 = vmatprep.subr.bf16.mxu1 %v1492_v33  ;;  %v1444_v2 = vmul.f32 %v1442_v5, %v2740_v63  ;;  %v3370_v33 = vld [vmem:[%s3791_s1 + $0x20] ss:$0 sm:$0xff] }
 0x569   : > { %1567 = vmatpush1.bf16.msra.mxu1 %v1491_v37  ;;  %v1437_v49 = vpop.permute.xlu0 %1436 }
 0x56a   : > { %v1439_v35 = vpop.permute.xlu1 %1438  ;;  %v1441_v16 = vsel %vm596_vm6, %v1435_v6, %v1437_v49 }
 0x56b   : > { %v1440_v1 = vsel %vm596_vm6, %v1437_v49, %v1439_v35  ;;  %v1443_v27 = vsel %vm596_vm6, %v1439_v35, %v1433_v7  ;;  %v1445_v46 = vmul.f32 %v1441_v16, %v2716_v40 }
 0x56c   : > { %v1446_v32 = vmul.f32 %v1440_v1, %v2721_v47  ;;  %v1447_v15 = vmul.f32 %v1443_v27, %v2713_v39 }
 0x56d   : > { %v1449_v3 = vpop.permute.xlu0 %1448 }
 0x56e   : > { %v1451_v28 = vpop.permute.xlu1 %1450 }
 0x56f   : > { %v1458_v20 = vsel %vm629_vm5, %v1449_v3, %v1451_v28 }
 0x570   : > { %v1460_v12 = vmul.f32 %v1458_v20, %v2726_v48  ;;  %v3385_v20 = vld [vmem:[%s3791_s1 + $0x28] ss:$0 sm:$0xff] }
 0x571   : > { %v1453_v13 = vpop.permute.xlu0 %1452 }
 0x572   : > { %v1457_v0 = vsel %vm629_vm5, %v1451_v28, %v1453_v13  ;;  %v1455_v17 = vpop.permute.xlu1 %1454  ;;  %v1493_v7 = vpack.c.bf16 %v1460_v12, %v1444_v2  ;;  %v3396_v2 = vld [vmem:[%s3791_s1 + $0x30] ss:$0 sm:$0xff] }
 0x573   : > { %v1461_v41 = vmul.f32 %v1457_v0, %v2734_v54  ;;  %v1456_v38 = vsel %vm629_vm5, %v1453_v13, %v1455_v17  ;;  %v1459_v42 = vsel %vm629_vm5, %v1455_v17, %v1449_v3  ;;  %v1346_v13 = vld [vmem:[%s3378_s20] sm:$0xff]  ;;  %v3402_v0 = vld [vmem:[%s3791_s1 + $0x38] ss:$0 sm:$0xff] }
 0x574   : > { %v1462_v8 = vmul.f32 %v1456_v38, %v2737_v59  ;;  %v1463_v31 = vmul.f32 %v1459_v42, %v2731_v50 }
 0x575   : > { %v1465_v22 = vpop.permute.xlu0 %1464  ;;  %v1494_v23 = vpack.c.bf16 %v1461_v41, %v1445_v46 }
 0x576   : > { %v1495_v36 = vpack.c.bf16 %v1462_v8, %v1446_v32  ;;  %v1467_v14 = vpop.permute.xlu1 %1466  ;;  %v1496_v37 = vpack.c.bf16 %v1463_v31, %v1447_v15  ;;  %v1480_v32 = vpack.c.bf16 %v1346_v13, %v1346_v13  ;;  %v2313_v13 = vld [vmem:[%s3266_s28 + $0x8] sm:$0xff] }
 0x577   : > { %v1474_v6 = vsel %vm662_vm7, %v1465_v22, %v1467_v14  ;;  %1527 = vmatprep.subr.bf16.mxu0 %v1494_v23 }
 0x578   : > { %v1476_v49 = vmul.f32 %v3370_v33, %v1474_v6  ;;  %1528 = vmatpush1.bf16.msra.mxu0 %v1493_v7  ;;  %1568 = vmatprep.subr.bf16.mxu1 %v1496_v37 }
 0x579   : > { %1569 = vmatpush1.bf16.msra.mxu1 %v1495_v36  ;;  %v1469_v35 = vpop.permute.xlu0 %1468 }
 0x57a   : > { %v1473_v3 = vsel %vm662_vm7, %v1467_v14, %v1469_v35  ;;  %v1471_v28 = vpop.permute.xlu1 %1470  ;;  %v1497_v5 = vpack.c.bf16 %v1476_v49, %v1476_v49 }
 0x57b   : > { %v1477_v16 = vmul.f32 %v3385_v20, %v1473_v3  ;;  %v1472_v1 = vsel %vm662_vm7, %v1469_v35, %v1471_v28  ;;  %v1475_v27 = vsel %vm662_vm7, %v1471_v28, %v1465_v22 }
 0x57c   : > { %v1478_v12 = vmul.f32 %v3396_v2, %v1472_v1  ;;  %v1479_v17 = vmul.f32 %v3402_v0, %v1475_v27  ;;  %v1510_v42 = vsel %vm717_vm8, %v1497_v5, 0 }
 0x57d   : > { %v1498_v46 = vpack.c.bf16 %v1477_v16, %v1477_v16 }
 0x57e   : > { %v1499_v41 = vpack.c.bf16 %v1478_v12, %v1478_v12  ;;  %v1500_v38 = vpack.c.bf16 %v1479_v17, %v1479_v17 }
 0x57f   : > { %2308 = vmatprep.subr.msk.bf16.mxu0 %vm717_vm8, %v1498_v46 }
 0x580   : > { %1530 = vmatpush1.bf16.msra.mxu0 %v1510_v42  ;;  %2310 = vmatprep.subr.msk.bf16.mxu1 %vm717_vm8, %v1500_v38  ;;  %v1516_v15 = vsel %vm717_vm8, %v1499_v41, 0 }
 0x581   : > { %1571 = vmatpush1.bf16.msra.mxu1 %v1516_v15 }
 0x583   : > { %2309 = vmatmul.mubr.msk.bf16.vlgmr.msra.gmra.mrb[12].mxu0 %vm713_vm9, %v1480_v32 }
 0x584   : > { %2311 = vmatmul.mubr.msk.bf16.vlgmr.msra.gmra.mrb[12].mxu1 %vm713_vm9, %v1480_v32  ;;  %1816 = vmatprep.mubr.bf16.mxu0 %v2385_v4 }
 0x585   : > { %1857 = vmatprep.mubr.bf16.mxu1 %v2385_v4 }
 0x58a   : > { %v1504_v8 = vpop.permute.xlu0 %1503 }
 0x656   : > { %v1555_v31 = vpop.f32.mrb[12].mxu0 }
 0x657   : > { %v1556_v22 = vadd.f32 %v1555_v31, %v1504_v8  ;;  %v1557_v23 = vpop.f32.mrb[13].mxu0  ;;  %v1596_v7 = vpop.f32.mrb[12].mxu1 }
 0x658   : > { %v1558_v36 = vadd.f32 %v1557_v23, %v1504_v8  ;;  %v1559_v14 = vpop.f32.mrb[14].mxu0  ;;  %v1598_v37 = vpop.f32.mrb[13].mxu1  ;;  %v1597_v49 = vadd.f32 %v1596_v7, %v1504_v8 }
 0x659   : > { %v3413_v6 = vmax.f32 %v1556_v22, 0.0  ;;  %v1560_v35 = vpop.f32.mrb[15].mxu0  ;;  %v1600_v3 = vpop.f32.mrb[14].mxu1  ;;  %v1599_v5 = vadd.f32 %v1598_v37, %v1504_v8 }
 0x65a   : > { %v3415_v28 = vmax.f32 %v1558_v36, 0.0  ;;  %v1601_v16 = vpop.f32.mrb[15].mxu1  ;;  %v3421_v1 = vmax.f32 %v1597_v49, 0.0 }
 0x65b   : > { %1611 = vrot.lane.b32.xlu1 %v3413_v6, %s2378_s8  ;;  %v3423_v27 = vmax.f32 %v1599_v5, 0.0 }
 0x65c   : > { %1613 = vrot.lane.b32.xlu0 %v3415_v28, %s2378_s8 }
 0x65f   : > { %1615 = vrot.lane.b32.xlu1 %v3421_v1, %s2378_s8 }
 0x660   : > { %1617 = vrot.lane.b32.xlu0 %v3423_v27, %s2378_s8 }
 0x663   : > { %1627 = vrot.lane.b32.xlu1 %v3413_v6, %s2379_s9 }
 0x664   : > { %1629 = vrot.lane.b32.xlu0 %v3415_v28, %s2379_s9 }
 0x667   : > { %1631 = vrot.lane.b32.xlu1 %v3421_v1, %s2379_s9 }
 0x668   : > { %1633 = vrot.lane.b32.xlu0 %v3423_v27, %s2379_s9 }
 0x66b   : > { %1643 = vrot.lane.b32.xlu1 %v3413_v6, %s2380_s10 }
 0x66c   : > { %1645 = vrot.lane.b32.xlu0 %v3415_v28, %s2380_s10 }
 0x66f   : > { %1647 = vrot.lane.b32.xlu1 %v3421_v1, %s2380_s10 }
 0x670   : > { %1649 = vrot.lane.b32.xlu0 %v3423_v27, %s2380_s10 }
 0x673   : > { %1659 = vrot.lane.b32.xlu1 %v3413_v6, %s2381_s11 }
 0x674   : > { %1661 = vrot.lane.b32.xlu0 %v3415_v28, %s2381_s11 }
 0x677   : > { %1663 = vrot.lane.b32.xlu1 %v3421_v1, %s2381_s11 }
 0x678   : > { %1665 = vrot.lane.b32.xlu0 %v3423_v27, %s2381_s11 }
 0x67b   : > { %1679 = vrot.lane.b32.xlu1 %v3413_v6, %s2382_s12 }
 0x67c   : > { %1681 = vrot.lane.b32.xlu0 %v3415_v28, %s2382_s12 }
 0x67f   : > { %1683 = vrot.lane.b32.xlu1 %v3421_v1, %s2382_s12 }
 0x680   : > { %1685 = vrot.lane.b32.xlu0 %v3423_v27, %s2382_s12 }
 0x683   : > { %1695 = vrot.lane.b32.xlu1 %v3413_v6, %s2383_s13 }
 0x684   : > { %1697 = vrot.lane.b32.xlu0 %v3415_v28, %s2383_s13 }
 0x687   : > { %1699 = vrot.lane.b32.xlu1 %v3421_v1, %s2383_s13 }
 0x688   : > { %1701 = vrot.lane.b32.xlu0 %v3423_v27, %s2383_s13 }
 0x68b   : > { %1711 = vrot.lane.b32.xlu1 %v3413_v6, %s2384_s14 }
 0x68c   : > { %1713 = vrot.lane.b32.xlu0 %v3415_v28, %s2384_s14 }
 0x68f   : > { %1715 = vrot.lane.b32.xlu1 %v3421_v1, %s2384_s14 }
 0x690   : > { %1717 = vrot.lane.b32.xlu0 %v3423_v27, %s2384_s14 }
 0x693   : > { %1727 = vrot.lane.b32.xlu1 %v3413_v6, %s2386_s15 }
 0x694   : > { %1729 = vrot.lane.b32.xlu0 %v3415_v28, %s2386_s15 }
 0x697   : > { %1731 = vrot.lane.b32.xlu1 %v3421_v1, %s2386_s15 }
 0x698   : > { %1733 = vrot.lane.b32.xlu0 %v3423_v27, %s2386_s15 }
 0x69b   : > { %1766 = vperm.xlu1 %2349, %v2313_v13  }
 0x6cd   : > { %v1612_v12 = vpop.permute.xlu1 %1611 }
 0x6ce   : > { %v1614_v17 = vpop.permute.xlu0 %1613 }
 0x6cf   : > { %v1621_v38 = vsel %vm411_vm0, %v1612_v12, %v1614_v17 }
 0x6d0   : > { %v1624_v8 = vmul.f32 %v1621_v38, %v2557_v18 }
 0x6d1   : > { %v1616_v46 = vpop.permute.xlu1 %1615 }
 0x6d2   : > { %v1618_v41 = vpop.permute.xlu0 %1617  ;;  %v1620_v36 = vsel %vm411_vm0, %v1614_v17, %v1616_v46 }
 0x6d3   : > { %v1619_v22 = vsel %vm411_vm0, %v1616_v46, %v1618_v41  ;;  %v1622_v23 = vsel %vm411_vm0, %v1618_v41, %v1612_v12  ;;  %v1625_v46 = vmul.f32 %v1620_v36, %v2586_v30 }
 0x6d4   : > { %v1623_v16 = vmul.f32 %v1622_v23, %v2570_v24  ;;  %v1626_v13 = vmul.f32 %v1619_v22, %v2576_v26 }
 0x6d5   : > { %v1628_v42 = vpop.permute.xlu1 %1627 }
 0x6d6   : > { %v1630_v32 = vpop.permute.xlu0 %1629 }
 0x6d7   : > { %v1637_v15 = vsel %vm444_vm1, %v1628_v42, %v1630_v32 }
 0x6d8   : > { %v1640_v31 = vmul.f32 %v1637_v15, %v2560_v19 }
 0x6d9   : > { %v1632_v7 = vpop.permute.xlu1 %1631 }
 0x6da   : > { %v1636_v14 = vsel %vm444_vm1, %v1630_v32, %v1632_v7  ;;  %v1634_v37 = vpop.permute.xlu0 %1633  ;;  %v1745_v49 = vpack.c.bf16 %v1640_v31, %v1624_v8 }
 0x6db   : > { %v1641_v35 = vmul.f32 %v1636_v14, %v2593_v34  ;;  %v1635_v3 = vsel %vm444_vm1, %v1632_v7, %v1634_v37  ;;  %v1638_v5 = vsel %vm444_vm1, %v1634_v37, %v1628_v42 }
 0x6dc   : > { %v1639_v12 = vmul.f32 %v1638_v5, %v2573_v25  ;;  %v1642_v17 = vmul.f32 %v1635_v3, %v2583_v29  ;;  %1784 = vmatprep.subr.bf16.mxu0 %v1745_v49 }
 0x6dd   : > { %v1644_v41 = vpop.permute.xlu1 %1643  ;;  %v1746_v8 = vpack.c.bf16 %v1641_v35, %v1625_v46 }
 0x6de   : > { %v1744_v38 = vpack.c.bf16 %v1639_v12, %v1623_v16  ;;  %v1646_v32 = vpop.permute.xlu0 %1645  ;;  %v1747_v15 = vpack.c.bf16 %v1642_v17, %v1626_v13 }
 0x6df   : > { %v1653_v22 = vsel %vm477_vm2, %v1644_v41, %v1646_v32 }
 0x6e0   : > { %1785 = vmatpush1.bf16.msra.mxu0 %v1744_v38  ;;  %1825 = vmatprep.subr.bf16.mxu1 %v1747_v15  ;;  %v1656_v36 = vmul.f32 %v1653_v22, %v2614_v57 }
 0x6e1   : > { %1826 = vmatpush1.bf16.msra.mxu1 %v1746_v8  ;;  %v1648_v42 = vpop.permute.xlu1 %1647 }
 0x6e2   : > { %v1650_v31 = vpop.permute.xlu0 %1649  ;;  %v1652_v5 = vsel %vm477_vm2, %v1646_v32, %v1648_v42 }
 0x6e3   : > { %v1651_v49 = vsel %vm477_vm2, %v1648_v42, %v1650_v31  ;;  %v1654_v35 = vsel %vm477_vm2, %v1650_v31, %v1644_v41  ;;  %v1657_v42 = vmul.f32 %v1652_v5, %v2625_v61 }
 0x6e4   : > { %v1655_v15 = vmul.f32 %v1654_v35, %v2622_v60  ;;  %v1658_v41 = vmul.f32 %v1651_v49, %v2628_v62  ;;  %v1675_v49 = vmul.f32 %v3413_v6, %v2671_v45  ;;  %v1677_v6 = vmul.f32 %v3421_v1, %v2674_v51 }
 0x6e5   : > { %v1660_v23 = vpop.permute.xlu1 %1659 }
 0x6e6   : > { %v1662_v7 = vpop.permute.xlu0 %1661 }
 0x6e7   : > { %v1669_v14 = vsel %vm510_vm3, %v1660_v23, %v1662_v7 }
 0x6e8   : > { %v1672_v37 = vmul.f32 %v1669_v14, %v2617_v58 }
 0x6e9   : > { %v1664_v3 = vpop.permute.xlu1 %1663 }
 0x6ea   : > { %v1668_v16 = vsel %vm510_vm3, %v1662_v7, %v1664_v3  ;;  %v1666_v13 = vpop.permute.xlu0 %1665  ;;  %v1749_v12 = vpack.c.bf16 %v1672_v37, %v1656_v36 }
 0x6eb   : > { %v1673_v17 = vmul.f32 %v1668_v16, %v2638_v11  ;;  %v1667_v46 = vsel %vm510_vm3, %v1664_v3, %v1666_v13  ;;  %v1670_v38 = vsel %vm510_vm3, %v1666_v13, %v1660_v23 }
 0x6ec   : > { %v1671_v8 = vmul.f32 %v1670_v38, %v2635_v9  ;;  %v1674_v32 = vmul.f32 %v1667_v46, %v2645_v21  ;;  %1786 = vmatprep.subr.bf16.mxu0 %v1749_v12 }
 0x6ed   : > { %v1680_v31 = vpop.permute.xlu1 %1679  ;;  %v1750_v36 = vpack.c.bf16 %v1673_v17, %v1657_v42  ;;  %v1676_v17 = vmul.f32 %v3415_v28, %v2665_v43 }
 0x6ee   : > { %v1748_v22 = vpack.c.bf16 %v1671_v8, %v1655_v15  ;;  %v1682_v7 = vpop.permute.xlu0 %1681  ;;  %v1751_v14 = vpack.c.bf16 %v1674_v32, %v1658_v41  ;;  %v1678_v15 = vmul.f32 %v3423_v27, %v2668_v44 }
 0x6ef   : > { %v1689_v37 = vsel %vm563_vm4, %v1680_v31, %v1682_v7 }
 0x6f0   : > { %1787 = vmatpush1.bf16.msra.mxu0 %v1748_v22  ;;  %1827 = vmatprep.subr.bf16.mxu1 %v1751_v14  ;;  %v1691_v35 = vmul.f32 %v1689_v37, %v2677_v52 }
 0x6f1   : > { %1828 = vmatpush1.bf16.msra.mxu1 %v1750_v36  ;;  %v1684_v23 = vpop.permute.xlu1 %1683 }
 0x6f2   : > { %v1688_v3 = vsel %vm563_vm4, %v1682_v7, %v1684_v23  ;;  %v1686_v5 = vpop.permute.xlu0 %1685  ;;  %v1752_v32 = vpack.c.bf16 %v1691_v35, %v1675_v49 }
 0x6f3   : > { %v1692_v16 = vmul.f32 %v1688_v3, %v2685_v55  ;;  %v1687_v13 = vsel %vm563_vm4, %v1684_v23, %v1686_v5  ;;  %v1690_v12 = vsel %vm563_vm4, %v1686_v5, %v1680_v31 }
 0x6f4   : > { %v1693_v46 = vmul.f32 %v1687_v13, %v2688_v56  ;;  %v1694_v38 = vmul.f32 %v1690_v12, %v2680_v53 }
 0x6f5   : > { %v1696_v41 = vpop.permute.xlu1 %1695  ;;  %v1753_v8 = vpack.c.bf16 %v1692_v16, %v1676_v17 }
 0x6f6   : > { %v1754_v42 = vpack.c.bf16 %v1693_v46, %v1677_v6  ;;  %v1698_v22 = vpop.permute.xlu0 %1697  ;;  %v1755_v7 = vpack.c.bf16 %v1694_v38, %v1678_v15 }
 0x6f7   : > { %1788 = vmatprep.subr.bf16.mxu0 %v1753_v8  ;;  %v1705_v36 = vsel %vm596_vm6, %v1696_v41, %v1698_v22 }
 0x6f8   : > { %1789 = vmatpush1.bf16.msra.mxu0 %v1752_v32  ;;  %1829 = vmatprep.subr.bf16.mxu1 %v1755_v7  ;;  %v1707_v3 = vmul.f32 %v1705_v36, %v2740_v63 }
 0x6f9   : > { %1830 = vmatpush1.bf16.msra.mxu1 %v1754_v42  ;;  %v1700_v28 = vpop.permute.xlu1 %1699 }
 0x6fa   : > { %v1702_v31 = vpop.permute.xlu0 %1701  ;;  %v1704_v37 = vsel %vm596_vm6, %v1698_v22, %v1700_v28 }
 0x6fb   : > { %v1703_v23 = vsel %vm596_vm6, %v1700_v28, %v1702_v31  ;;  %v1706_v49 = vsel %vm596_vm6, %v1702_v31, %v1696_v41  ;;  %v1708_v12 = vmul.f32 %v1704_v37, %v2716_v40 }
 0x6fc   : > { %v1709_v38 = vmul.f32 %v1703_v23, %v2721_v47  ;;  %v1710_v15 = vmul.f32 %v1706_v49, %v2713_v39 }
 0x6fd   : > { %v1712_v1 = vpop.permute.xlu1 %1711 }
 0x6fe   : > { %v1714_v14 = vpop.permute.xlu0 %1713 }
 0x6ff   : > { %v1721_v27 = vsel %vm629_vm5, %v1712_v1, %v1714_v14 }
 0x700   : > { %v1723_v5 = vmul.f32 %v1721_v27, %v2726_v48 }
 0x701   : > { %v1716_v35 = vpop.permute.xlu1 %1715 }
 0x702   : > { %v1720_v16 = vsel %vm629_vm5, %v1714_v14, %v1716_v35  ;;  %v1718_v13 = vpop.permute.xlu0 %1717  ;;  %v1756_v22 = vpack.c.bf16 %v1723_v5, %v1707_v3  ;;  %v2312_v5 = vld [vmem:[%s3378_s20 + $0x8] sm:$0xff] }
 0x703   : > { %v1724_v17 = vmul.f32 %v1720_v16, %v2734_v54  ;;  %v1719_v6 = vsel %vm629_vm5, %v1716_v35, %v1718_v13  ;;  %v1722_v46 = vsel %vm629_vm5, %v1718_v13, %v1712_v1 }
 0x704   : > { %v1725_v41 = vmul.f32 %v1719_v6, %v2737_v59  ;;  %v1726_v8 = vmul.f32 %v1722_v46, %v2731_v50 }
 0x705   : > { %v1728_v32 = vpop.permute.xlu1 %1727  ;;  %v1757_v42 = vpack.c.bf16 %v1724_v17, %v1708_v12 }
 0x706   : > { %v1758_v7 = vpack.c.bf16 %v1725_v41, %v1709_v38  ;;  %v1730_v28 = vpop.permute.xlu0 %1729  ;;  %v1759_v31 = vpack.c.bf16 %v1726_v8, %v1710_v15  ;;  %v1743_v38 = vpack.c.bf16 %v2312_v5, %v2312_v5 }
 0x707   : > { %v1737_v14 = vsel %vm662_vm7, %v1728_v32, %v1730_v28  ;;  %1790 = vmatprep.subr.bf16.mxu0 %v1757_v42 }
 0x708   : > { %v1739_v1 = vmul.f32 %v3370_v33, %v1737_v14  ;;  %1791 = vmatpush1.bf16.msra.mxu0 %v1756_v22  ;;  %1831 = vmatprep.subr.bf16.mxu1 %v1759_v31 }
 0x709   : > { %1832 = vmatpush1.bf16.msra.mxu1 %v1758_v7  ;;  %v1732_v36 = vpop.permute.xlu1 %1731 }
 0x70a   : > { %v1736_v27 = vsel %vm662_vm7, %v1730_v28, %v1732_v36  ;;  %v1734_v37 = vpop.permute.xlu0 %1733  ;;  %v1760_v23 = vpack.c.bf16 %v1739_v1, %v1739_v1 }
 0x70b   : > { %v1740_v49 = vmul.f32 %v3385_v20, %v1736_v27  ;;  %v1735_v35 = vsel %vm662_vm7, %v1732_v36, %v1734_v37  ;;  %v1738_v3 = vsel %vm662_vm7, %v1734_v37, %v1728_v32 }
 0x70c   : > { %v1741_v16 = vmul.f32 %v3396_v2, %v1735_v35  ;;  %v1742_v13 = vmul.f32 %v3402_v0, %v1738_v3  ;;  %v1773_v46 = vsel %vm717_vm8, %v1760_v23, 0  ;;  %v2319_v3 = vld [vmem:[%s3266_s28 + $0x10] sm:$0xff] }
 0x70d   : > { %v1761_v12 = vpack.c.bf16 %v1740_v49, %v1740_v49 }
 0x70e   : > { %v1762_v17 = vpack.c.bf16 %v1741_v16, %v1741_v16  ;;  %v1763_v6 = vpack.c.bf16 %v1742_v13, %v1742_v13 }
 0x70f   : > { %2314 = vmatprep.subr.msk.bf16.mxu0 %vm717_vm8, %v1761_v12 }
 0x710   : > { %1793 = vmatpush1.bf16.msra.mxu0 %v1773_v46  ;;  %2316 = vmatprep.subr.msk.bf16.mxu1 %vm717_vm8, %v1763_v6  ;;  %v1779_v15 = vsel %vm717_vm8, %v1762_v17, 0 }
 0x711   : > { %1834 = vmatpush1.bf16.msra.mxu1 %v1779_v15 }
 0x713   : > { %2315 = vmatmul.mubr.msk.bf16.vlgmr.msra.gmra.mrb[16].mxu0 %vm713_vm9, %v1743_v38 }
 0x714   : > { %2317 = vmatmul.mubr.msk.bf16.vlgmr.msra.gmra.mrb[16].mxu1 %vm713_vm9, %v1743_v38  ;;  %2079 = vmatprep.mubr.bf16.mxu0 %v2385_v4 }
 0x715   : > { %2120 = vmatprep.mubr.bf16.mxu1 %v2385_v4 }
 0x71a   : > { %v1767_v41 = vpop.permute.xlu1 %1766 }
 0x7e6   : > { %v1818_v8 = vpop.f32.mrb[16].mxu0 }
 0x7e7   : > { %v1819_v32 = vadd.f32 %v1818_v8, %v1767_v41  ;;  %v1820_v42 = vpop.f32.mrb[17].mxu0  ;;  %v1859_v22 = vpop.f32.mrb[16].mxu1 }
 0x7e8   : > { %v1821_v7 = vadd.f32 %v1820_v42, %v1767_v41  ;;  %v1822_v28 = vpop.f32.mrb[18].mxu0  ;;  %v1861_v31 = vpop.f32.mrb[17].mxu1  ;;  %v1860_v1 = vadd.f32 %v1859_v22, %v1767_v41 }
 0x7e9   : > { %v3599_v14 = vmax.f32 %v1819_v32, 0.0  ;;  %v1823_v36 = vpop.f32.mrb[19].mxu0  ;;  %v1863_v27 = vpop.f32.mrb[18].mxu1  ;;  %v1862_v23 = vadd.f32 %v1861_v31, %v1767_v41 }
 0x7ea   : > { %v3601_v37 = vmax.f32 %v1821_v7, 0.0  ;;  %v1864_v49 = vpop.f32.mrb[19].mxu1  ;;  %v3607_v4 = vmax.f32 %v1860_v1, 0.0 }
 0x7eb   : > { %1874 = vrot.lane.b32.xlu0 %v3599_v14, %s2378_s8  ;;  %v3609_v35 = vmax.f32 %v1862_v23, 0.0 }
 0x7ec   : > { %1876 = vrot.lane.b32.xlu1 %v3601_v37, %s2378_s8 }
 0x7ef   : > { %1878 = vrot.lane.b32.xlu0 %v3607_v4, %s2378_s8 }
 0x7f0   : > { %1880 = vrot.lane.b32.xlu1 %v3609_v35, %s2378_s8 }
 0x7f3   : > { %1890 = vrot.lane.b32.xlu0 %v3599_v14, %s2379_s9 }
 0x7f4   : > { %1892 = vrot.lane.b32.xlu1 %v3601_v37, %s2379_s9 }
 0x7f7   : > { %1894 = vrot.lane.b32.xlu0 %v3607_v4, %s2379_s9 }
 0x7f8   : > { %1896 = vrot.lane.b32.xlu1 %v3609_v35, %s2379_s9 }
 0x7fb   : > { %1906 = vrot.lane.b32.xlu0 %v3599_v14, %s2380_s10 }
 0x7fc   : > { %1908 = vrot.lane.b32.xlu1 %v3601_v37, %s2380_s10 }
 0x7ff   : > { %1910 = vrot.lane.b32.xlu0 %v3607_v4, %s2380_s10 }
 0x800   : > { %1912 = vrot.lane.b32.xlu1 %v3609_v35, %s2380_s10  ;;  %s385_s10 = scalar_lea.vmem %s3797_s7, %s2442_s27 }
 0x803   : > { %1922 = vrot.lane.b32.xlu0 %v3599_v14, %s2381_s11 }
 0x804   : > { %1924 = vrot.lane.b32.xlu1 %v3601_v37, %s2381_s11 }
 0x807   : > { %1926 = vrot.lane.b32.xlu0 %v3607_v4, %s2381_s11 }
 0x808   : > { %1928 = vrot.lane.b32.xlu1 %v3609_v35, %s2381_s11 }
 0x80b   : > { %1942 = vrot.lane.b32.xlu0 %v3599_v14, %s2382_s12 }
 0x80c   : > { %1944 = vrot.lane.b32.xlu1 %v3601_v37, %s2382_s12 }
 0x80f   : > { %1946 = vrot.lane.b32.xlu0 %v3607_v4, %s2382_s12 }
 0x810   : > { %1948 = vrot.lane.b32.xlu1 %v3609_v35, %s2382_s12 }
 0x813   : > { %1958 = vrot.lane.b32.xlu0 %v3599_v14, %s2383_s13 }
 0x814   : > { %1960 = vrot.lane.b32.xlu1 %v3601_v37, %s2383_s13 }
 0x817   : > { %1962 = vrot.lane.b32.xlu0 %v3607_v4, %s2383_s13 }
 0x818   : > { %1964 = vrot.lane.b32.xlu1 %v3609_v35, %s2383_s13 }
 0x81b   : > { %1974 = vrot.lane.b32.xlu0 %v3599_v14, %s2384_s14 }
 0x81c   : > { %1976 = vrot.lane.b32.xlu1 %v3601_v37, %s2384_s14 }
 0x81f   : > { %1978 = vrot.lane.b32.xlu0 %v3607_v4, %s2384_s14 }
 0x820   : > { %1980 = vrot.lane.b32.xlu1 %v3609_v35, %s2384_s14 }
 0x823   : > { %1990 = vrot.lane.b32.xlu0 %v3599_v14, %s2386_s15 }
 0x824   : > { %1992 = vrot.lane.b32.xlu1 %v3601_v37, %s2386_s15 }
 0x827   : > { %1994 = vrot.lane.b32.xlu0 %v3607_v4, %s2386_s15 }
 0x828   : > { %1996 = vrot.lane.b32.xlu1 %v3609_v35, %s2386_s15 }
 0x82b   : > { %2029 = vperm.xlu0 %2348, %v2319_v3  }
 0x85d   : > { %v1875_v5 = vpop.permute.xlu0 %1874 }
 0x85e   : > { %v1877_v16 = vpop.permute.xlu1 %1876 }
 0x85f   : > { %v1884_v17 = vsel %vm411_vm0, %v1875_v5, %v1877_v16 }
 0x860   : > { %v1887_v15 = vmul.f32 %v1884_v17, %v2557_v18 }
 0x861   : > { %v1879_v13 = vpop.permute.xlu0 %1878 }
 0x862   : > { %v1881_v12 = vpop.permute.xlu1 %1880  ;;  %v1883_v22 = vsel %vm411_vm0, %v1877_v16, %v1879_v13 }
 0x863   : > { %v1882_v8 = vsel %vm411_vm0, %v1879_v13, %v1881_v12  ;;  %v1885_v32 = vsel %vm411_vm0, %v1881_v12, %v1875_v5  ;;  %v1888_v3 = vmul.f32 %v1883_v22, %v2586_v30 }
 0x864   : > { %v1886_v36 = vmul.f32 %v1885_v32, %v2570_v24  ;;  %v1889_v27 = vmul.f32 %v1882_v8, %v2576_v26 }
 0x865   : > { %v1891_v6 = vpop.permute.xlu0 %1890 }
 0x866   : > { %v1893_v46 = vpop.permute.xlu1 %1892 }
 0x867   : > { %v1900_v38 = vsel %vm444_vm1, %v1891_v6, %v1893_v46 }
 0x868   : > { %v1903_v41 = vmul.f32 %v1900_v38, %v2560_v19 }
 0x869   : > { %v1895_v42 = vpop.permute.xlu0 %1894 }
 0x86a   : > { %v1899_v7 = vsel %vm444_vm1, %v1893_v46, %v1895_v42  ;;  %v1897_v28 = vpop.permute.xlu1 %1896  ;;  %v2008_v31 = vpack.c.bf16 %v1903_v41, %v1887_v15 }
 0x86b   : > { %v1904_v1 = vmul.f32 %v1899_v7, %v2593_v34  ;;  %v1898_v18 = vsel %vm444_vm1, %v1895_v42, %v1897_v28  ;;  %v1901_v19 = vsel %vm444_vm1, %v1897_v28, %v1891_v6 }
 0x86c   : > { %v1902_v23 = vmul.f32 %v1901_v19, %v2573_v25  ;;  %v1905_v49 = vmul.f32 %v1898_v18, %v2583_v29  ;;  %2047 = vmatprep.subr.bf16.mxu0 %v2008_v31 }
 0x86d   : > { %v1907_v5 = vpop.permute.xlu0 %1906  ;;  %v2009_v12 = vpack.c.bf16 %v1904_v1, %v1888_v3 }
 0x86e   : > { %v2007_v16 = vpack.c.bf16 %v1902_v23, %v1886_v36  ;;  %v1909_v34 = vpop.permute.xlu1 %1908  ;;  %v2010_v13 = vpack.c.bf16 %v1905_v49, %v1889_v27 }
 0x86f   : > { %v1916_v24 = vsel %vm477_vm2, %v1907_v5, %v1909_v34 }
 0x870   : > { %2048 = vmatpush1.bf16.msra.mxu0 %v2007_v16  ;;  %2088 = vmatprep.subr.bf16.mxu1 %v2010_v13  ;;  %v1919_v30 = vmul.f32 %v1916_v24, %v2614_v57  ;;  %v1939_v13 = vmul.f32 %v3601_v37, %v2665_v43 }
 0x871   : > { %2089 = vmatpush1.bf16.msra.mxu1 %v2009_v12  ;;  %v1911_v17 = vpop.permute.xlu0 %1910  ;;  %v1941_v12 = vmul.f32 %v3609_v35, %v2668_v44 }
 0x872   : > { %v1913_v6 = vpop.permute.xlu1 %1912  ;;  %v1915_v8 = vsel %vm477_vm2, %v1909_v34, %v1911_v17 }
 0x873   : > { %v1914_v38 = vsel %vm477_vm2, %v1911_v17, %v1913_v6  ;;  %v1917_v15 = vsel %vm477_vm2, %v1913_v6, %v1907_v5  ;;  %v1920_v19 = vmul.f32 %v1915_v8, %v2625_v61 }
 0x874   : > { %v1918_v28 = vmul.f32 %v1917_v15, %v2622_v60  ;;  %v1921_v31 = vmul.f32 %v1914_v38, %v2628_v62  ;;  %v1938_v62 = vmul.f32 %v3599_v14, %v2671_v45  ;;  %v1940_v45 = vmul.f32 %v3607_v4, %v2674_v51 }
 0x875   : > { %v1923_v26 = vpop.permute.xlu0 %1922 }
 0x876   : > { %v1925_v25 = vpop.permute.xlu1 %1924 }
 0x877   : > { %v1932_v29 = vsel %vm510_vm3, %v1923_v26, %v1925_v25 }
 0x878   : > { %v1935_v46 = vmul.f32 %v1932_v29, %v2617_v58 }
 0x879   : > { %v1927_v41 = vpop.permute.xlu0 %1926 }
 0x87a   : > { %v1931_v32 = vsel %vm510_vm3, %v1925_v25, %v1927_v41  ;;  %v1929_v42 = vpop.permute.xlu1 %1928  ;;  %v2012_v22 = vpack.c.bf16 %v1935_v46, %v1919_v30 }
 0x87b   : > { %v1936_v7 = vmul.f32 %v1931_v32, %v2638_v11  ;;  %v1930_v57 = vsel %vm510_vm3, %v1927_v41, %v1929_v42  ;;  %v1933_v58 = vsel %vm510_vm3, %v1929_v42, %v1923_v26 }
 0x87c   : > { %v1934_v1 = vmul.f32 %v1933_v58, %v2635_v9  ;;  %v1937_v18 = vmul.f32 %v1930_v57, %v2645_v21  ;;  %2049 = vmatprep.subr.bf16.mxu0 %v2012_v22 }
 0x87d   : > { %v1943_v36 = vpop.permute.xlu0 %1942  ;;  %v2013_v49 = vpack.c.bf16 %v1936_v7, %v1920_v19 }
 0x87e   : > { %v2011_v27 = vpack.c.bf16 %v1934_v1, %v1918_v28  ;;  %v1945_v11 = vpop.permute.xlu1 %1944  ;;  %v2014_v23 = vpack.c.bf16 %v1937_v18, %v1921_v31 }
 0x87f   : > { %v1952_v3 = vsel %vm563_vm4, %v1943_v36, %v1945_v11 }
 0x880   : > { %2050 = vmatpush1.bf16.msra.mxu0 %v2011_v27  ;;  %2090 = vmatprep.subr.bf16.mxu1 %v2014_v23  ;;  %v1954_v9 = vmul.f32 %v1952_v3, %v2677_v52  ;;  %v2318_v23 = vld [vmem:[%s3378_s20 + $0x10] sm:$0xff] }
 0x881   : > { %2091 = vmatpush1.bf16.msra.mxu1 %v2013_v49  ;;  %v1947_v60 = vpop.permute.xlu0 %1946 }
 0x882   : > { %v1951_v61 = vsel %vm563_vm4, %v1945_v11, %v1947_v60  ;;  %v1949_v21 = vpop.permute.xlu1 %1948  ;;  %v2015_v6 = vpack.c.bf16 %v1954_v9, %v1938_v62 }
 0x883   : > { %v1955_v5 = vmul.f32 %v1951_v61, %v2685_v55  ;;  %v1950_v16 = vsel %vm563_vm4, %v1947_v60, %v1949_v21  ;;  %v1953_v34 = vsel %vm563_vm4, %v1949_v21, %v1943_v36  ;;  %v2006_v61 = vpack.c.bf16 %v2318_v23, %v2318_v23 }
 0x884   : > { %v1956_v52 = vmul.f32 %v1950_v16, %v2688_v56  ;;  %v1957_v14 = vmul.f32 %v1953_v34, %v2680_v53 }
 0x885   : > { %v1959_v55 = vpop.permute.xlu0 %1958  ;;  %v2016_v17 = vpack.c.bf16 %v1955_v5, %v1939_v13 }
 0x886   : > { %v2017_v24 = vpack.c.bf16 %v1956_v52, %v1940_v45  ;;  %v1961_v26 = vpop.permute.xlu1 %1960  ;;  %v2018_v25 = vpack.c.bf16 %v1957_v14, %v1941_v12 }
 0x887   : > { %2051 = vmatprep.subr.bf16.mxu0 %v2016_v17  ;;  %v1968_v53 = vsel %vm596_vm6, %v1959_v55, %v1961_v26 }
 0x888   : > { %2052 = vmatpush1.bf16.msra.mxu0 %v2015_v6  ;;  %2092 = vmatprep.subr.bf16.mxu1 %v2018_v25  ;;  %v1970_v46 = vmul.f32 %v1968_v53, %v2740_v63 }
 0x889   : > { %2093 = vmatpush1.bf16.msra.mxu1 %v2017_v24  ;;  %v1963_v43 = vpop.permute.xlu0 %1962 }
 0x88a   : > { %v1965_v37 = vpop.permute.xlu1 %1964  ;;  %v1967_v56 = vsel %vm596_vm6, %v1961_v26, %v1963_v43 }
 0x88b   : > { %v1966_v35 = vsel %vm596_vm6, %v1963_v43, %v1965_v37  ;;  %v1969_v29 = vsel %vm596_vm6, %v1965_v37, %v1959_v55  ;;  %v1971_v8 = vmul.f32 %v1967_v56, %v2716_v40 }
 0x88c   : > { %v1972_v7 = vmul.f32 %v1966_v35, %v2721_v47  ;;  %v1973_v63 = vmul.f32 %v1969_v29, %v2713_v39 }
 0x88d   : > { %v1975_v51 = vpop.permute.xlu0 %1974 }
 0x88e   : > { %v1977_v4 = vpop.permute.xlu1 %1976 }
 0x88f   : > { %v1984_v44 = vsel %vm629_vm5, %v1975_v51, %v1977_v4 }
 0x890   : > { %v1986_v38 = vmul.f32 %v1984_v44, %v2726_v48 }
 0x891   : > { %v1979_v30 = vpop.permute.xlu0 %1978 }
 0x892   : > { %v1983_v15 = vsel %vm629_vm5, %v1977_v4, %v1979_v30  ;;  %v1981_v41 = vpop.permute.xlu1 %1980  ;;  %v2019_v31 = vpack.c.bf16 %v1986_v38, %v1970_v46 }
 0x893   : > { %v1987_v32 = vmul.f32 %v1983_v15, %v2734_v54  ;;  %v1982_v42 = vsel %vm629_vm5, %v1979_v30, %v1981_v41  ;;  %v1985_v22 = vsel %vm629_vm5, %v1981_v41, %v1975_v51 }
 0x894   : > { %v1988_v48 = vmul.f32 %v1982_v42, %v2737_v59  ;;  %v1989_v57 = vmul.f32 %v1985_v22, %v2731_v50 }
 0x895   : > { %v1991_v58 = vpop.permute.xlu0 %1990  ;;  %v2020_v28 = vpack.c.bf16 %v1987_v32, %v1971_v8 }
 0x896   : > { %v2021_v40 = vpack.c.bf16 %v1988_v48, %v1972_v7  ;;  %v1993_v54 = vpop.permute.xlu1 %1992  ;;  %v2022_v1 = vpack.c.bf16 %v1989_v57, %v1973_v63 }
 0x897   : > { %v2000_v18 = vsel %vm662_vm7, %v1991_v58, %v1993_v54  ;;  %2053 = vmatprep.subr.bf16.mxu0 %v2020_v28 }
 0x898   : > { %v2002_v19 = vmul.f32 %v3370_v33, %v2000_v18  ;;  %2054 = vmatpush1.bf16.msra.mxu0 %v2019_v31  ;;  %2094 = vmatprep.subr.bf16.mxu1 %v2022_v1 }
 0x899   : > { %2095 = vmatpush1.bf16.msra.mxu1 %v2021_v40  ;;  %v1995_v39 = vpop.permute.xlu0 %1994 }
 0x89a   : > { %v1999_v47 = vsel %vm662_vm7, %v1993_v54, %v1995_v39  ;;  %v1997_v50 = vpop.permute.xlu1 %1996  ;;  %v2023_v59 = vpack.c.bf16 %v2002_v19, %v2002_v19 }
 0x89b   : > { %v2003_v36 = vmul.f32 %v3385_v20, %v1999_v47  ;;  %v1998_v27 = vsel %vm662_vm7, %v1995_v39, %v1997_v50  ;;  %v2001_v11 = vsel %vm662_vm7, %v1997_v50, %v1991_v58 }
 0x89c   : > { %v2004_v33 = vmul.f32 %v3396_v2, %v1998_v27  ;;  %v2005_v49 = vmul.f32 %v3402_v0, %v2001_v11  ;;  %v2036_v9 = vsel %vm717_vm8, %v2023_v59, 0 }
 0x89d   : > { %v2024_v3 = vpack.c.bf16 %v2003_v36, %v2003_v36 }
 0x89e   : > { %v2025_v60 = vpack.c.bf16 %v2004_v33, %v2004_v33  ;;  %v2026_v62 = vpack.c.bf16 %v2005_v49, %v2005_v49 }
 0x89f   : > { %2320 = vmatprep.subr.msk.bf16.mxu0 %vm717_vm8, %v2024_v3 }
 0x8a0   : > { %2056 = vmatpush1.bf16.msra.mxu0 %v2036_v9  ;;  %2322 = vmatprep.subr.msk.bf16.mxu1 %vm717_vm8, %v2026_v62  ;;  %v2042_v20 = vsel %vm717_vm8, %v2025_v60, 0 }
 0x8a1   : > { %2097 = vmatpush1.bf16.msra.mxu1 %v2042_v20 }
 0x8a3   : > { %2321 = vmatmul.mubr.msk.bf16.vlgmr.msra.gmra.mrb[20].mxu0 %vm713_vm9, %v2006_v61 }
 0x8a4   : > { %2323 = vmatmul.mubr.msk.bf16.vlgmr.msra.gmra.mrb[20].mxu1 %vm713_vm9, %v2006_v61 }
 0x8aa   : > { %v2030_v10 = vpop.permute.xlu0 %2029 }
 0x976   : > { %v2081_v2 = vpop.f32.mrb[20].mxu0 }
 0x977   : > { %v2082_v0 = vadd.f32 %v2081_v2, %v2030_v10  ;;  %v2083_v21 = vpop.f32.mrb[21].mxu0  ;;  %v2122_v5 = vpop.f32.mrb[20].mxu1 }
 0x978   : > { %v2084_v16 = vadd.f32 %v2083_v21, %v2030_v10  ;;  %v2123_v34 = vadd.f32 %v2122_v5, %v2030_v10  ;;  %v2085_v13 = vpop.f32.mrb[22].mxu0  ;;  %v2124_v45 = vpop.f32.mrb[21].mxu1 }
 0x979   : > { %2358 = vtanh.f32 %v2082_v0  ;;  %v2125_v52 = vadd.f32 %v2124_v45, %v2030_v10  ;;  %v2086_v14 = vpop.f32.mrb[23].mxu0  ;;  %v2126_v12 = vpop.f32.mrb[22].mxu1 }
 0x97a   : > { %2360 = vtanh.f32 %v2084_v16  ;;  %v2127_v55 = vpop.f32.mrb[23].mxu1 }
 0x97b   : > { %2362 = vtanh.f32 %v2123_v34 }
 0x97c   : > { %2364 = vtanh.f32 %v2125_v52 }
 0x983   : > { %v2359_v17 = vpop.eup %2358 }
 0x984   : > { %v2361_v6 = vpop.eup %2360  ;;  %2133 = vst [vmem:[%s385_s10] sm:$0xff] %v2359_v17 }
 0x985   : > { %v2363_v24 = vpop.eup %2362  ;;  %2134 = vst [vmem:[%s385_s10 + $0x8] sm:$0xff] %v2361_v6 }
 0x986   : > { %v2365_v26 = vpop.eup %2364  ;;  %2135 = vst [vmem:[%s385_s10 + $0x10] sm:$0xff] %v2363_v24 }
 0x987   : > { %2136 = vst [vmem:[%s385_s10 + $0x18] sm:$0xff] %v2365_v26 }
 0x988 PF: > { %s18_s24 = sadd.s32 1, %s2376_s24  }
 0x989   : > { %p15_p5 = scmp.ge.s32.totalorder %s18_s24, 4  }
 0x98b   :  { %17 = sbr.rel (!%p15_p5) target bundleno = 1 (0x1), region = 106 }

</bundles_post_ra>
